<compile_context>
chip_gen: v7x
topology: tpu7x:2x2x1
jax: 0.10.0
libtpu: 0.0.40
codegen_flags: <defaults>
</compile_context>

<pallas_src>
import functools

import jax
import jax.numpy as jnp
from jax.experimental import pallas as pl
from jax.experimental.pallas import tpu as pltpu


# ----------------------------------------------------------------------------
# Fused kernel (one grid step == one batch element)
# ----------------------------------------------------------------------------
def _fused_kernel(x_ref, m_ref, caw1_ref, cab1_ref, caw2_ref, cab2_ref,
                  w1_ref, b1_ref, w2_ref, b2_ref, w3_ref, b3_ref,
                  o_ref, xp_ref, pm_ref, *, C, H, W, pad):
    HW = H * W
    x_ct = x_ref[0]                       # (C, H*W)  lane-dense (256 lanes)
    masks = m_ref[...]                    # (9, H*W)  1.0 inside image, 0.0 at borders

    # ---- channel attention: GAP (ones-matmul on MXU) -> 1x1 -> ReLU -> 1x1 -> sigmoid
    pooled = jnp.dot(x_ct, jnp.full((HW, 1), 1.0 / HW, jnp.float32),
                     preferred_element_type=jnp.float32)                      # (C, 1)
    h = jnp.dot(caw1_ref[...], pooled, preferred_element_type=jnp.float32) + cab1_ref[...]
    h = jnp.maximum(h, 0.0)                                                   # (Cr, 1)
    a = jax.nn.sigmoid(
        jnp.dot(caw2_ref[...], h, preferred_element_type=jnp.float32) + cab2_ref[...])  # (C, 1)

    # ---- zero the row-padded scratch once per step (guard bands stay 0 for all 3 convs)
    xp_ref[...] = jnp.zeros((C, 2 * pad + HW), jnp.float32)

    def conv3x3(inp_ct, w_ref, b_ref):
        """'SAME' 3x3 conv as a single im2col matmul, channels-first."""
        # interior of the row-padded buffer <- input (lane offset `pad` is 128-aligned)
        xp_ref[:, pad:pad + HW] = inp_ct
        # im2col: P[k*C + c, l] = inp[c, pixel l shifted by tap k]  (0 outside the image)
        for k in range(9):
            dy, dx = k // 3 - 1, k % 3 - 1
            start = pad + dy * W + dx
            pm_ref[k * C:(k + 1) * C, :] = (
                xp_ref[:, start:start + HW] * masks[k:k + 1, :])
        # single (C, 9C) @ (9C, HW) matmul, K = 144
        return jnp.dot(w_ref[...], pm_ref[...],
                       preferred_element_type=jnp.float32) + b_ref[...]

    t = conv3x3(x_ct, w1_ref, b1_ref)                   # (C, H*W)
    t = jnp.maximum(conv3x3(t, w2_ref, b2_ref), 0.0)    # rows >= C8 are exactly 0 (padded Cout)
    t = jax.nn.sigmoid(conv3x3(t, w3_ref, b3_ref))      # (C, H*W)  (padded Cin, zero weights)

    # ---- s = (1 - t) * a + t * x   (a broadcasts per-channel over all pixels)
    o_ref[0] = ((1.0 - t) * a + t * x_ct).astype(o_ref.dtype)


# ----------------------------------------------------------------------------
# Wrapper: NCHW in / NCHW out (PyTorch layout), single pallas_call
# ----------------------------------------------------------------------------
def feature_refinement_block(x_nchw, p):
    N, C, H, W = x_nchw.shape
    HW = H * W
    pad = 128                              # lane-aligned guard offset; needs pad >= W + 1
    assert pad >= W + 1, "increase `pad` for wide images"
    Cr = p["ca_w1"].shape[1]
    C8 = p["w2"].shape[0]

    # -- host-side parameter repack (one-time): im2col weight matrices, channel-first biases
    def im2col_w(w_oihw):                  # (O, I, 3, 3) -> (O, 9*I), column = (ky*3+kx)*I + c
        co, ci = w_oihw.shape[0], w_oihw.shape[1]
        return jnp.transpose(w_oihw, (0, 2, 3, 1)).reshape(co, 9 * ci)

    w1m = im2col_w(p["w1"])                                                   # (C, 9C)
    w2m = jnp.pad(im2col_w(p["w2"]), ((0, C - C8), (0, 0)))                   # Cout 2 -> C (zeros)
    w3m = im2col_w(jnp.pad(p["w3"], ((0, 0), (0, C - C8), (0, 0), (0, 0))))   # Cin 2 -> C (zeros)
    b1k = p["b1"].reshape(C, 1)
    b2k = jnp.pad(p["b2"], (0, C - C8)).reshape(C, 1)
    b3k = p["b3"].reshape(C, 1)
    caw1 = p["ca_w1"].T                                                        # (Cr, C)
    cab1 = p["ca_b1"].reshape(Cr, 1)
    caw2 = p["ca_w2"].T                                                        # (C, Cr)
    cab2 = p["ca_b2"].reshape(C, 1)

    # -- per-tap validity masks (handle image borders of the flattened H*W axis)
    ii = jnp.arange(HW, dtype=jnp.int32) // W
    jj = jnp.arange(HW, dtype=jnp.int32) % W
    masks = jnp.stack(
        [((ii + dy >= 0) & (ii + dy < H) & (jj + dx >= 0) & (jj + dx < W)).astype(jnp.float32)
         for dy in (-1, 0, 1) for dx in (-1, 0, 1)], axis=0)                   # (9, HW)

    x_cf = x_nchw.reshape(N, C, HW)        # free reshape: stays channels-first, no transpose

    kernel = functools.partial(_fused_kernel, C=C, H=H, W=W, pad=pad)
    out = pl.pallas_call(
        kernel,
        out_shape=jax.ShapeDtypeStruct((N, C, HW), x_nchw.dtype),
        grid=(N,),
        in_specs=[
            pl.BlockSpec((1, C, HW), lambda n: (n, 0, 0)),      # x (channels-first, lane-dense)
            pl.BlockSpec((9, HW), lambda n: (0, 0)),            # tap masks
            pl.BlockSpec((Cr, C), lambda n: (0, 0)),            # CA fc1 weight (transposed)
            pl.BlockSpec((Cr, 1), lambda n: (0, 0)),            # CA fc1 bias
            pl.BlockSpec((C, Cr), lambda n: (0, 0)),            # CA fc2 weight (transposed)
            pl.BlockSpec((C, 1), lambda n: (0, 0)),             # CA fc2 bias
            pl.BlockSpec((C, 9 * C), lambda n: (0, 0)),         # conv1 im2col weight
            pl.BlockSpec((C, 1), lambda n: (0, 0)),             # conv1 bias
            pl.BlockSpec((C, 9 * C), lambda n: (0, 0)),         # conv2 im2col weight (Cout padded)
            pl.BlockSpec((C, 1), lambda n: (0, 0)),             # conv2 bias (padded)
            pl.BlockSpec((C, 9 * C), lambda n: (0, 0)),         # conv3 im2col weight (Cin padded)
            pl.BlockSpec((C, 1), lambda n: (0, 0)),             # conv3 bias
        ],
        out_specs=pl.BlockSpec((1, C, HW), lambda n: (n, 0, 0)),
        scratch_shapes=[
            pltpu.VMEM((C, 2 * pad + HW), jnp.float32),         # row-padded conv input (32 KiB)
            pltpu.VMEM((9 * C, HW), jnp.float32),               # im2col patch matrix (144 KiB)
        ],
        compiler_params=pltpu.CompilerParams(dimension_semantics=("parallel",)),
    )(x_cf, masks, caw1, cab1, caw2, cab2, w1m, b1k, w2m, b2k, w3m, b3k)

    return out.reshape(N, C, H, W)


# ----------------------------------------------------------------------------
# Pure-JAX reference (for correctness check)
# ----------------------------------------------------------------------------
def _reference(x, p):
    pooled = jnp.mean(x, axis=(2, 3))                                   # (N, C)
    h = jax.nn.relu(pooled @ p["ca_w1"] + p["ca_b1"])
    a = jax.nn.sigmoid(h @ p["ca_w2"] + p["ca_b2"])[:, :, None, None]   # (N, C, 1, 1)

    def conv(inp, w, b):
        y = jax.lax.conv_general_dilated(
            inp, w, (1, 1), "SAME",
            dimension_numbers=("NCHW", "OIHW", "NCHW"))
        return y + b[None, :, None, None]

    t = conv(x, p["w1"], p["b1"])
    t = jax.nn.relu(conv(t, p["w2"], p["b2"]))
    t = jax.nn.sigmoid(conv(t, p["w3"], p["b3"]))
    return (1.0 - t) * a + t * x


# ----------------------------------------------------------------------------
# Main
# ----------------------------------------------------------------------------
if __name__ == "__main__":
    N, C, H, W = 2, 16, 16, 16          # channel=16, reduction=4 -> C//r=4, C//8=2
    reduction = 4
    Cr, C8 = C // reduction, C // 8

    key = jax.random.PRNGKey(0)
    ks = jax.random.split(key, 11)

    params = {
        # channel attention (1x1 convs as matmuls, stored as (Cin, Cout) + 1-D bias)
        "ca_w1": 0.1 * jax.random.normal(ks[0], (C, Cr), jnp.float32),
        "ca_b1": 0.1 * jax.random.normal(ks[1], (Cr,), jnp.float32),
        "ca_w2": 0.1 * jax.random.normal(ks[2], (Cr, C), jnp.float32),
        "ca_b2": 0.1 * jax.random.normal(ks[3], (C,), jnp.float32),
        # spatial attention 3x3 convs in PyTorch OIHW layout
        "w1": 0.1 * jax.random.normal(ks[4], (C, C, 3, 3), jnp.float32),
        "b1": 0.1 * jax.random.normal(ks[5], (C,), jnp.float32),
        "w2": 0.1 * jax.random.normal(ks[6], (C8, C, 3, 3), jnp.float32),
        "b2": 0.1 * jax.random.normal(ks[7], (C8,), jnp.float32),
        "w3": 0.1 * jax.random.normal(ks[8], (C, C8, 3, 3), jnp.float32),
        "b3": 0.1 * jax.random.normal(ks[9], (C,), jnp.float32),
    }

    x = jax.random.normal(ks[10], (N, C, H, W), jnp.float32)            # NCHW like PyTorch

    out = feature_refinement_block(x, params)
    out = jax.block_until_ready(out)

    ref = _reference(x, params)
    assert out.shape == ref.shape == (N, C, H, W)
    max_err = float(jnp.max(jnp.abs(out - ref)))
    assert max_err < 2e-4, f"mismatch vs reference: max abs err {max_err}"

    print("KERNEL_OK")
</pallas_src>

<mosaic_0001>
module attributes {stable_mosaic.version = 11 : i64} {
  func.func @_fused_kernel(%arg0: i32, %arg1: memref<1x16x256xf32, #tpu.memory_space<vmem>>, %arg2: memref<9x256xf32, #tpu.memory_space<vmem>>, %arg3: memref<4x16xf32, #tpu.memory_space<vmem>>, %arg4: memref<4x1xf32, #tpu.memory_space<vmem>>, %arg5: memref<16x4xf32, #tpu.memory_space<vmem>>, %arg6: memref<16x1xf32, #tpu.memory_space<vmem>>, %arg7: memref<16x144xf32, #tpu.memory_space<vmem>>, %arg8: memref<16x1xf32, #tpu.memory_space<vmem>>, %arg9: memref<16x144xf32, #tpu.memory_space<vmem>>, %arg10: memref<16x1xf32, #tpu.memory_space<vmem>>, %arg11: memref<16x144xf32, #tpu.memory_space<vmem>>, %arg12: memref<16x1xf32, #tpu.memory_space<vmem>>, %arg13: memref<1x16x256xf32, #tpu.memory_space<vmem>>, %arg14: memref<16x512xf32, #tpu.memory_space<vmem>>, %arg15: memref<144x256xf32, #tpu.memory_space<vmem>>) attributes {dimension_semantics = [#tpu.dimension_semantics<parallel>], iteration_bounds = array<i64: 2>, scalar_prefetch = 0 : i64, scratch_operands = 2 : i64, tpu.core_type = #tpu.core_type<tc>, window_params = [{transform_indices = @transform_0, window_bounds = array<i64: 1, 16, 256>}, {pipeline_mode = #tpu.pipeline_mode<synchronous>, transform_indices = @transform_1, window_bounds = array<i64: 9, 256>}, {pipeline_mode = #tpu.pipeline_mode<synchronous>, transform_indices = @transform_2, window_bounds = array<i64: 4, 16>}, {pipeline_mode = #tpu.pipeline_mode<synchronous>, transform_indices = @transform_3, window_bounds = array<i64: 4, 1>}, {pipeline_mode = #tpu.pipeline_mode<synchronous>, transform_indices = @transform_4, window_bounds = array<i64: 16, 4>}, {pipeline_mode = #tpu.pipeline_mode<synchronous>, transform_indices = @transform_5, window_bounds = array<i64: 16, 1>}, {pipeline_mode = #tpu.pipeline_mode<synchronous>, transform_indices = @transform_6, window_bounds = array<i64: 16, 144>}, {pipeline_mode = #tpu.pipeline_mode<synchronous>, transform_indices = @transform_7, window_bounds = array<i64: 16, 1>}, {pipeline_mode = #tpu.pipeline_mode<synchronous>, transform_indices = @transform_8, window_bounds = array<i64: 16, 144>}, {pipeline_mode = #tpu.pipeline_mode<synchronous>, transform_indices = @transform_9, window_bounds = array<i64: 16, 1>}, {pipeline_mode = #tpu.pipeline_mode<synchronous>, transform_indices = @transform_10, window_bounds = array<i64: 16, 144>}, {pipeline_mode = #tpu.pipeline_mode<synchronous>, transform_indices = @transform_11, window_bounds = array<i64: 16, 1>}, {transform_indices = @transform_12, window_bounds = array<i64: 1, 16, 256>}]} {
    %c0 = arith.constant 0 : index
    %c0_0 = arith.constant 0 : index
    %c0_1 = arith.constant 0 : index
    %0 = vector.load %arg1[%c0, %c0_0, %c0_1] : memref<1x16x256xf32, #tpu.memory_space<vmem>>, vector<1x16x256xf32>
    %1 = vector.shape_cast %0 : vector<1x16x256xf32> to vector<16x256xf32>
    %c0_2 = arith.constant 0 : index
    %c0_3 = arith.constant 0 : index
    %2 = vector.load %arg2[%c0_2, %c0_3] : memref<9x256xf32, #tpu.memory_space<vmem>>, vector<9x256xf32>
    %cst = arith.constant 3.906250e-03 : f32
    %3 = vector.broadcast %cst : f32 to vector<256x1xf32>
    %cst_4 = arith.constant dense<0.000000e+00> : vector<16x1xf32>
    %4 = tpu.matmul %1, %3, %cst_4 {dimension_numbers = #tpu.dot_dimension_numbers<[1], [0], [0], [1], [0, 0, 1, 1], [], []>} : vector<16x256xf32>, vector<256x1xf32>, vector<16x1xf32> -> vector<16x1xf32>
    %c0_5 = arith.constant 0 : index
    %c0_6 = arith.constant 0 : index
    %5 = vector.load %arg3[%c0_5, %c0_6] : memref<4x16xf32, #tpu.memory_space<vmem>>, vector<4x16xf32>
    %cst_7 = arith.constant dense<0.000000e+00> : vector<4x1xf32>
    %6 = tpu.matmul %5, %4, %cst_7 {dimension_numbers = #tpu.dot_dimension_numbers<[1], [0], [0], [1], [0, 0, 1, 1], [], []>} : vector<4x16xf32>, vector<16x1xf32>, vector<4x1xf32> -> vector<4x1xf32>
    %c0_8 = arith.constant 0 : index
    %c0_9 = arith.constant 0 : index
    %7 = vector.load %arg4[%c0_8, %c0_9] : memref<4x1xf32, #tpu.memory_space<vmem>>, vector<4x1xf32>
    %8 = arith.addf %6, %7 : vector<4x1xf32>
    %cst_10 = arith.constant 0.000000e+00 : f32
    %9 = vector.broadcast %cst_10 : f32 to vector<4x1xf32>
    %10 = arith.maximumf %8, %9 : vector<4x1xf32>
    %c0_11 = arith.constant 0 : index
    %c0_12 = arith.constant 0 : index
    %11 = vector.load %arg5[%c0_11, %c0_12] : memref<16x4xf32, #tpu.memory_space<vmem>>, vector<16x4xf32>
    %cst_13 = arith.constant dense<0.000000e+00> : vector<16x1xf32>
    %12 = tpu.matmul %11, %10, %cst_13 {dimension_numbers = #tpu.dot_dimension_numbers<[1], [0], [0], [1], [0, 0, 1, 1], [], []>} : vector<16x4xf32>, vector<4x1xf32>, vector<16x1xf32> -> vector<16x1xf32>
    %c0_14 = arith.constant 0 : index
    %c0_15 = arith.constant 0 : index
    %13 = vector.load %arg6[%c0_14, %c0_15] : memref<16x1xf32, #tpu.memory_space<vmem>>, vector<16x1xf32>
    %14 = arith.addf %12, %13 : vector<16x1xf32>
    %15 = arith.negf %14 : vector<16x1xf32>
    %16 = math.exp %15 : vector<16x1xf32>
    %cst_16 = arith.constant 1.000000e+00 : f32
    %17 = vector.broadcast %cst_16 : f32 to vector<16x1xf32>
    %18 = arith.addf %17, %16 : vector<16x1xf32>
    %19 = arith.divf %17, %18 : vector<16x1xf32>
    %cst_17 = arith.constant 0.000000e+00 : f32
    %20 = vector.broadcast %cst_17 : f32 to vector<16x512xf32>
    %c0_18 = arith.constant 0 : index
    %c0_19 = arith.constant 0 : index
    %21 = vector.load %arg14[%c0_18, %c0_19] : memref<16x512xf32, #tpu.memory_space<vmem>>, vector<16x512xf32>
    tpu.vector_store %arg14[%c0_18, %c0_19], %20 {strides = array<i32>} : memref<16x512xf32, #tpu.memory_space<vmem>>, vector<16x512xf32>,
    %c0_20 = arith.constant 0 : index
    %c128 = arith.constant 128 : index
    %22 = vector.load %arg14[%c0_20, %c128] : memref<16x512xf32, #tpu.memory_space<vmem>>, vector<16x256xf32>
    tpu.vector_store %arg14[%c0_20, %c128], %1 {strides = array<i32>} : memref<16x512xf32, #tpu.memory_space<vmem>>, vector<16x256xf32>,
    %c0_21 = arith.constant 0 : index
    %c111 = arith.constant 111 : index
    %23 = vector.load %arg14[%c0_21, %c111] : memref<16x512xf32, #tpu.memory_space<vmem>>, vector<16x256xf32>
    %24 = vector.extract_strided_slice %2 {offsets = [0, 0], sizes = [1, 256], strides = [1, 1]} : vector<9x256xf32> to vector<1x256xf32>
    %25 = vector.broadcast %24 : vector<1x256xf32> to vector<16x256xf32>
    %26 = arith.mulf %23, %25 : vector<16x256xf32>
    %c0_22 = arith.constant 0 : index
    %c0_23 = arith.constant 0 : index
    %27 = vector.load %arg15[%c0_22, %c0_23] : memref<144x256xf32, #tpu.memory_space<vmem>>, vector<16x256xf32>
    tpu.vector_store %arg15[%c0_22, %c0_23], %26 {strides = array<i32>} : memref<144x256xf32, #tpu.memory_space<vmem>>, vector<16x256xf32>,
    %c0_24 = arith.constant 0 : index
    %c112 = arith.constant 112 : index
    %28 = vector.load %arg14[%c0_24, %c112] : memref<16x512xf32, #tpu.memory_space<vmem>>, vector<16x256xf32>
    %29 = vector.extract_strided_slice %2 {offsets = [1, 0], sizes = [1, 256], strides = [1, 1]} : vector<9x256xf32> to vector<1x256xf32>
    %30 = vector.broadcast %29 : vector<1x256xf32> to vector<16x256xf32>
    %31 = arith.mulf %28, %30 : vector<16x256xf32>
    %c16 = arith.constant 16 : index
    %c0_25 = arith.constant 0 : index
    %32 = vector.load %arg15[%c16, %c0_25] : memref<144x256xf32, #tpu.memory_space<vmem>>, vector<16x256xf32>
    tpu.vector_store %arg15[%c16, %c0_25], %31 {strides = array<i32>} : memref<144x256xf32, #tpu.memory_space<vmem>>, vector<16x256xf32>,
    %c0_26 = arith.constant 0 : index
    %c113 = arith.constant 113 : index
    %33 = vector.load %arg14[%c0_26, %c113] : memref<16x512xf32, #tpu.memory_space<vmem>>, vector<16x256xf32>
    %34 = vector.extract_strided_slice %2 {offsets = [2, 0], sizes = [1, 256], strides = [1, 1]} : vector<9x256xf32> to vector<1x256xf32>
    %35 = vector.broadcast %34 : vector<1x256xf32> to vector<16x256xf32>
    %36 = arith.mulf %33, %35 : vector<16x256xf32>
    %c32 = arith.constant 32 : index
    %c0_27 = arith.constant 0 : index
    %37 = vector.load %arg15[%c32, %c0_27] : memref<144x256xf32, #tpu.memory_space<vmem>>, vector<16x256xf32>
    tpu.vector_store %arg15[%c32, %c0_27], %36 {strides = array<i32>} : memref<144x256xf32, #tpu.memory_space<vmem>>, vector<16x256xf32>,
    %c0_28 = arith.constant 0 : index
    %c127 = arith.constant 127 : index
    %38 = vector.load %arg14[%c0_28, %c127] : memref<16x512xf32, #tpu.memory_space<vmem>>, vector<16x256xf32>
    %39 = vector.extract_strided_slice %2 {offsets = [3, 0], sizes = [1, 256], strides = [1, 1]} : vector<9x256xf32> to vector<1x256xf32>
    %40 = vector.broadcast %39 : vector<1x256xf32> to vector<16x256xf32>
    %41 = arith.mulf %38, %40 : vector<16x256xf32>
    %c48 = arith.constant 48 : index
    %c0_29 = arith.constant 0 : index
    %42 = vector.load %arg15[%c48, %c0_29] : memref<144x256xf32, #tpu.memory_space<vmem>>, vector<16x256xf32>
    tpu.vector_store %arg15[%c48, %c0_29], %41 {strides = array<i32>} : memref<144x256xf32, #tpu.memory_space<vmem>>, vector<16x256xf32>,
    %c0_30 = arith.constant 0 : index
    %c128_31 = arith.constant 128 : index
    %43 = vector.load %arg14[%c0_30, %c128_31] : memref<16x512xf32, #tpu.memory_space<vmem>>, vector<16x256xf32>
    %44 = vector.extract_strided_slice %2 {offsets = [4, 0], sizes = [1, 256], strides = [1, 1]} : vector<9x256xf32> to vector<1x256xf32>
    %45 = vector.broadcast %44 : vector<1x256xf32> to vector<16x256xf32>
    %46 = arith.mulf %43, %45 : vector<16x256xf32>
    %c64 = arith.constant 64 : index
    %c0_32 = arith.constant 0 : index
    %47 = vector.load %arg15[%c64, %c0_32] : memref<144x256xf32, #tpu.memory_space<vmem>>, vector<16x256xf32>
    tpu.vector_store %arg15[%c64, %c0_32], %46 {strides = array<i32>} : memref<144x256xf32, #tpu.memory_space<vmem>>, vector<16x256xf32>,
    %c0_33 = arith.constant 0 : index
    %c129 = arith.constant 129 : index
    %48 = vector.load %arg14[%c0_33, %c129] : memref<16x512xf32, #tpu.memory_space<vmem>>, vector<16x256xf32>
    %49 = vector.extract_strided_slice %2 {offsets = [5, 0], sizes = [1, 256], strides = [1, 1]} : vector<9x256xf32> to vector<1x256xf32>
    %50 = vector.broadcast %49 : vector<1x256xf32> to vector<16x256xf32>
    %51 = arith.mulf %48, %50 : vector<16x256xf32>
    %c80 = arith.constant 80 : index
    %c0_34 = arith.constant 0 : index
    %52 = vector.load %arg15[%c80, %c0_34] : memref<144x256xf32, #tpu.memory_space<vmem>>, vector<16x256xf32>
    tpu.vector_store %arg15[%c80, %c0_34], %51 {strides = array<i32>} : memref<144x256xf32, #tpu.memory_space<vmem>>, vector<16x256xf32>,
    %c0_35 = arith.constant 0 : index
    %c143 = arith.constant 143 : index
    %53 = vector.load %arg14[%c0_35, %c143] : memref<16x512xf32, #tpu.memory_space<vmem>>, vector<16x256xf32>
    %54 = vector.extract_strided_slice %2 {offsets = [6, 0], sizes = [1, 256], strides = [1, 1]} : vector<9x256xf32> to vector<1x256xf32>
    %55 = vector.broadcast %54 : vector<1x256xf32> to vector<16x256xf32>
    %56 = arith.mulf %53, %55 : vector<16x256xf32>
    %c96 = arith.constant 96 : index
    %c0_36 = arith.constant 0 : index
    %57 = vector.load %arg15[%c96, %c0_36] : memref<144x256xf32, #tpu.memory_space<vmem>>, vector<16x256xf32>
    tpu.vector_store %arg15[%c96, %c0_36], %56 {strides = array<i32>} : memref<144x256xf32, #tpu.memory_space<vmem>>, vector<16x256xf32>,
    %c0_37 = arith.constant 0 : index
    %c144 = arith.constant 144 : index
    %58 = vector.load %arg14[%c0_37, %c144] : memref<16x512xf32, #tpu.memory_space<vmem>>, vector<16x256xf32>
    %59 = vector.extract_strided_slice %2 {offsets = [7, 0], sizes = [1, 256], strides = [1, 1]} : vector<9x256xf32> to vector<1x256xf32>
    %60 = vector.broadcast %59 : vector<1x256xf32> to vector<16x256xf32>
    %61 = arith.mulf %58, %60 : vector<16x256xf32>
    %c112_38 = arith.constant 112 : index
    %c0_39 = arith.constant 0 : index
    %62 = vector.load %arg15[%c112_38, %c0_39] : memref<144x256xf32, #tpu.memory_space<vmem>>, vector<16x256xf32>
    tpu.vector_store %arg15[%c112_38, %c0_39], %61 {strides = array<i32>} : memref<144x256xf32, #tpu.memory_space<vmem>>, vector<16x256xf32>,
    %c0_40 = arith.constant 0 : index
    %c145 = arith.constant 145 : index
    %63 = vector.load %arg14[%c0_40, %c145] : memref<16x512xf32, #tpu.memory_space<vmem>>, vector<16x256xf32>
    %64 = vector.extract_strided_slice %2 {offsets = [8, 0], sizes = [1, 256], strides = [1, 1]} : vector<9x256xf32> to vector<1x256xf32>
    %65 = vector.broadcast %64 : vector<1x256xf32> to vector<16x256xf32>
    %66 = arith.mulf %63, %65 : vector<16x256xf32>
    %c128_41 = arith.constant 128 : index
    %c0_42 = arith.constant 0 : index
    %67 = vector.load %arg15[%c128_41, %c0_42] : memref<144x256xf32, #tpu.memory_space<vmem>>, vector<16x256xf32>
    tpu.vector_store %arg15[%c128_41, %c0_42], %66 {strides = array<i32>} : memref<144x256xf32, #tpu.memory_space<vmem>>, vector<16x256xf32>,
    %c0_43 = arith.constant 0 : index
    %c0_44 = arith.constant 0 : index
    %68 = vector.load %arg7[%c0_43, %c0_44] : memref<16x144xf32, #tpu.memory_space<vmem>>, vector<16x144xf32>
    %c0_45 = arith.constant 0 : index
    %c0_46 = arith.constant 0 : index
    %69 = vector.load %arg15[%c0_45, %c0_46] : memref<144x256xf32, #tpu.memory_space<vmem>>, vector<144x256xf32>
    %cst_47 = arith.constant dense<0.000000e+00> : vector<16x256xf32>
    %70 = tpu.matmul %68, %69, %cst_47 {dimension_numbers = #tpu.dot_dimension_numbers<[1], [0], [0], [1], [0, 0, 1, 1], [], []>} : vector<16x144xf32>, vector<144x256xf32>, vector<16x256xf32> -> vector<16x256xf32>
    %c0_48 = arith.constant 0 : index
    %c0_49 = arith.constant 0 : index
    %71 = vector.load %arg8[%c0_48, %c0_49] : memref<16x1xf32, #tpu.memory_space<vmem>>, vector<16x1xf32>
    %72 = vector.broadcast %71 : vector<16x1xf32> to vector<16x256xf32>
    %73 = arith.addf %70, %72 : vector<16x256xf32>
    %c0_50 = arith.constant 0 : index
    %c128_51 = arith.constant 128 : index
    %74 = vector.load %arg14[%c0_50, %c128_51] : memref<16x512xf32, #tpu.memory_space<vmem>>, vector<16x256xf32>
    tpu.vector_store %arg14[%c0_50, %c128_51], %73 {strides = array<i32>} : memref<16x512xf32, #tpu.memory_space<vmem>>, vector<16x256xf32>,
    %c0_52 = arith.constant 0 : index
    %c111_53 = arith.constant 111 : index
    %75 = vector.load %arg14[%c0_52, %c111_53] : memref<16x512xf32, #tpu.memory_space<vmem>>, vector<16x256xf32>
    %76 = vector.extract_strided_slice %2 {offsets = [0, 0], sizes = [1, 256], strides = [1, 1]} : vector<9x256xf32> to vector<1x256xf32>
    %77 = vector.broadcast %76 : vector<1x256xf32> to vector<16x256xf32>
    %78 = arith.mulf %75, %77 : vector<16x256xf32>
    %c0_54 = arith.constant 0 : index
    %c0_55 = arith.constant 0 : index
    %79 = vector.load %arg15[%c0_54, %c0_55] : memref<144x256xf32, #tpu.memory_space<vmem>>, vector<16x256xf32>
    tpu.vector_store %arg15[%c0_54, %c0_55], %78 {strides = array<i32>} : memref<144x256xf32, #tpu.memory_space<vmem>>, vector<16x256xf32>,
    %c0_56 = arith.constant 0 : index
    %c112_57 = arith.constant 112 : index
    %80 = vector.load %arg14[%c0_56, %c112_57] : memref<16x512xf32, #tpu.memory_space<vmem>>, vector<16x256xf32>
    %81 = vector.extract_strided_slice %2 {offsets = [1, 0], sizes = [1, 256], strides = [1, 1]} : vector<9x256xf32> to vector<1x256xf32>
    %82 = vector.broadcast %81 : vector<1x256xf32> to vector<16x256xf32>
    %83 = arith.mulf %80, %82 : vector<16x256xf32>
    %c16_58 = arith.constant 16 : index
    %c0_59 = arith.constant 0 : index
    %84 = vector.load %arg15[%c16_58, %c0_59] : memref<144x256xf32, #tpu.memory_space<vmem>>, vector<16x256xf32>
    tpu.vector_store %arg15[%c16_58, %c0_59], %83 {strides = array<i32>} : memref<144x256xf32, #tpu.memory_space<vmem>>, vector<16x256xf32>,
    %c0_60 = arith.constant 0 : index
    %c113_61 = arith.constant 113 : index
    %85 = vector.load %arg14[%c0_60, %c113_61] : memref<16x512xf32, #tpu.memory_space<vmem>>, vector<16x256xf32>
    %86 = vector.extract_strided_slice %2 {offsets = [2, 0], sizes = [1, 256], strides = [1, 1]} : vector<9x256xf32> to vector<1x256xf32>
    %87 = vector.broadcast %86 : vector<1x256xf32> to vector<16x256xf32>
    %88 = arith.mulf %85, %87 : vector<16x256xf32>
    %c32_62 = arith.constant 32 : index
    %c0_63 = arith.constant 0 : index
    %89 = vector.load %arg15[%c32_62, %c0_63] : memref<144x256xf32, #tpu.memory_space<vmem>>, vector<16x256xf32>
    tpu.vector_store %arg15[%c32_62, %c0_63], %88 {strides = array<i32>} : memref<144x256xf32, #tpu.memory_space<vmem>>, vector<16x256xf32>,
    %c0_64 = arith.constant 0 : index
    %c127_65 = arith.constant 127 : index
    %90 = vector.load %arg14[%c0_64, %c127_65] : memref<16x512xf32, #tpu.memory_space<vmem>>, vector<16x256xf32>
    %91 = vector.extract_strided_slice %2 {offsets = [3, 0], sizes = [1, 256], strides = [1, 1]} : vector<9x256xf32> to vector<1x256xf32>
    %92 = vector.broadcast %91 : vector<1x256xf32> to vector<16x256xf32>
    %93 = arith.mulf %90, %92 : vector<16x256xf32>
    %c48_66 = arith.constant 48 : index
    %c0_67 = arith.constant 0 : index
    %94 = vector.load %arg15[%c48_66, %c0_67] : memref<144x256xf32, #tpu.memory_space<vmem>>, vector<16x256xf32>
    tpu.vector_store %arg15[%c48_66, %c0_67], %93 {strides = array<i32>} : memref<144x256xf32, #tpu.memory_space<vmem>>, vector<16x256xf32>,
    %c0_68 = arith.constant 0 : index
    %c128_69 = arith.constant 128 : index
    %95 = vector.load %arg14[%c0_68, %c128_69] : memref<16x512xf32, #tpu.memory_space<vmem>>, vector<16x256xf32>
    %96 = vector.extract_strided_slice %2 {offsets = [4, 0], sizes = [1, 256], strides = [1, 1]} : vector<9x256xf32> to vector<1x256xf32>
    %97 = vector.broadcast %96 : vector<1x256xf32> to vector<16x256xf32>
    %98 = arith.mulf %95, %97 : vector<16x256xf32>
    %c64_70 = arith.constant 64 : index
    %c0_71 = arith.constant 0 : index
    %99 = vector.load %arg15[%c64_70, %c0_71] : memref<144x256xf32, #tpu.memory_space<vmem>>, vector<16x256xf32>
    tpu.vector_store %arg15[%c64_70, %c0_71], %98 {strides = array<i32>} : memref<144x256xf32, #tpu.memory_space<vmem>>, vector<16x256xf32>,
    %c0_72 = arith.constant 0 : index
    %c129_73 = arith.constant 129 : index
    %100 = vector.load %arg14[%c0_72, %c129_73] : memref<16x512xf32, #tpu.memory_space<vmem>>, vector<16x256xf32>
    %101 = vector.extract_strided_slice %2 {offsets = [5, 0], sizes = [1, 256], strides = [1, 1]} : vector<9x256xf32> to vector<1x256xf32>
    %102 = vector.broadcast %101 : vector<1x256xf32> to vector<16x256xf32>
    %103 = arith.mulf %100, %102 : vector<16x256xf32>
    %c80_74 = arith.constant 80 : index
    %c0_75 = arith.constant 0 : index
    %104 = vector.load %arg15[%c80_74, %c0_75] : memref<144x256xf32, #tpu.memory_space<vmem>>, vector<16x256xf32>
    tpu.vector_store %arg15[%c80_74, %c0_75], %103 {strides = array<i32>} : memref<144x256xf32, #tpu.memory_space<vmem>>, vector<16x256xf32>,
    %c0_76 = arith.constant 0 : index
    %c143_77 = arith.constant 143 : index
    %105 = vector.load %arg14[%c0_76, %c143_77] : memref<16x512xf32, #tpu.memory_space<vmem>>, vector<16x256xf32>
    %106 = vector.extract_strided_slice %2 {offsets = [6, 0], sizes = [1, 256], strides = [1, 1]} : vector<9x256xf32> to vector<1x256xf32>
    %107 = vector.broadcast %106 : vector<1x256xf32> to vector<16x256xf32>
    %108 = arith.mulf %105, %107 : vector<16x256xf32>
    %c96_78 = arith.constant 96 : index
    %c0_79 = arith.constant 0 : index
    %109 = vector.load %arg15[%c96_78, %c0_79] : memref<144x256xf32, #tpu.memory_space<vmem>>, vector<16x256xf32>
    tpu.vector_store %arg15[%c96_78, %c0_79], %108 {strides = array<i32>} : memref<144x256xf32, #tpu.memory_space<vmem>>, vector<16x256xf32>,
    %c0_80 = arith.constant 0 : index
    %c144_81 = arith.constant 144 : index
    %110 = vector.load %arg14[%c0_80, %c144_81] : memref<16x512xf32, #tpu.memory_space<vmem>>, vector<16x256xf32>
    %111 = vector.extract_strided_slice %2 {offsets = [7, 0], sizes = [1, 256], strides = [1, 1]} : vector<9x256xf32> to vector<1x256xf32>
    %112 = vector.broadcast %111 : vector<1x256xf32> to vector<16x256xf32>
    %113 = arith.mulf %110, %112 : vector<16x256xf32>
    %c112_82 = arith.constant 112 : index
    %c0_83 = arith.constant 0 : index
    %114 = vector.load %arg15[%c112_82, %c0_83] : memref<144x256xf32, #tpu.memory_space<vmem>>, vector<16x256xf32>
    tpu.vector_store %arg15[%c112_82, %c0_83], %113 {strides = array<i32>} : memref<144x256xf32, #tpu.memory_space<vmem>>, vector<16x256xf32>,
    %c0_84 = arith.constant 0 : index
    %c145_85 = arith.constant 145 : index
    %115 = vector.load %arg14[%c0_84, %c145_85] : memref<16x512xf32, #tpu.memory_space<vmem>>, vector<16x256xf32>
    %116 = vector.extract_strided_slice %2 {offsets = [8, 0], sizes = [1, 256], strides = [1, 1]} : vector<9x256xf32> to vector<1x256xf32>
    %117 = vector.broadcast %116 : vector<1x256xf32> to vector<16x256xf32>
    %118 = arith.mulf %115, %117 : vector<16x256xf32>
    %c128_86 = arith.constant 128 : index
    %c0_87 = arith.constant 0 : index
    %119 = vector.load %arg15[%c128_86, %c0_87] : memref<144x256xf32, #tpu.memory_space<vmem>>, vector<16x256xf32>
    tpu.vector_store %arg15[%c128_86, %c0_87], %118 {strides = array<i32>} : memref<144x256xf32, #tpu.memory_space<vmem>>, vector<16x256xf32>,
    %c0_88 = arith.constant 0 : index
    %c0_89 = arith.constant 0 : index
    %120 = vector.load %arg9[%c0_88, %c0_89] : memref<16x144xf32, #tpu.memory_space<vmem>>, vector<16x144xf32>
    %c0_90 = arith.constant 0 : index
    %c0_91 = arith.constant 0 : index
    %121 = vector.load %arg15[%c0_90, %c0_91] : memref<144x256xf32, #tpu.memory_space<vmem>>, vector<144x256xf32>
    %cst_92 = arith.constant dense<0.000000e+00> : vector<16x256xf32>
    %122 = tpu.matmul %120, %121, %cst_92 {dimension_numbers = #tpu.dot_dimension_numbers<[1], [0], [0], [1], [0, 0, 1, 1], [], []>} : vector<16x144xf32>, vector<144x256xf32>, vector<16x256xf32> -> vector<16x256xf32>
    %c0_93 = arith.constant 0 : index
    %c0_94 = arith.constant 0 : index
    %123 = vector.load %arg10[%c0_93, %c0_94] : memref<16x1xf32, #tpu.memory_space<vmem>>, vector<16x1xf32>
    %124 = vector.broadcast %123 : vector<16x1xf32> to vector<16x256xf32>
    %125 = arith.addf %122, %124 : vector<16x256xf32>
    %cst_95 = arith.constant 0.000000e+00 : f32
    %126 = vector.broadcast %cst_95 : f32 to vector<16x256xf32>
    %127 = arith.maximumf %125, %126 : vector<16x256xf32>
    %c0_96 = arith.constant 0 : index
    %c128_97 = arith.constant 128 : index
    %128 = vector.load %arg14[%c0_96, %c128_97] : memref<16x512xf32, #tpu.memory_space<vmem>>, vector<16x256xf32>
    tpu.vector_store %arg14[%c0_96, %c128_97], %127 {strides = array<i32>} : memref<16x512xf32, #tpu.memory_space<vmem>>, vector<16x256xf32>,
    %c0_98 = arith.constant 0 : index
    %c111_99 = arith.constant 111 : index
    %129 = vector.load %arg14[%c0_98, %c111_99] : memref<16x512xf32, #tpu.memory_space<vmem>>, vector<16x256xf32>
    %130 = vector.extract_strided_slice %2 {offsets = [0, 0], sizes = [1, 256], strides = [1, 1]} : vector<9x256xf32> to vector<1x256xf32>
    %131 = vector.broadcast %130 : vector<1x256xf32> to vector<16x256xf32>
    %132 = arith.mulf %129, %131 : vector<16x256xf32>
    %c0_100 = arith.constant 0 : index
    %c0_101 = arith.constant 0 : index
    %133 = vector.load %arg15[%c0_100, %c0_101] : memref<144x256xf32, #tpu.memory_space<vmem>>, vector<16x256xf32>
    tpu.vector_store %arg15[%c0_100, %c0_101], %132 {strides = array<i32>} : memref<144x256xf32, #tpu.memory_space<vmem>>, vector<16x256xf32>,
    %c0_102 = arith.constant 0 : index
    %c112_103 = arith.constant 112 : index
    %134 = vector.load %arg14[%c0_102, %c112_103] : memref<16x512xf32, #tpu.memory_space<vmem>>, vector<16x256xf32>
    %135 = vector.extract_strided_slice %2 {offsets = [1, 0], sizes = [1, 256], strides = [1, 1]} : vector<9x256xf32> to vector<1x256xf32>
    %136 = vector.broadcast %135 : vector<1x256xf32> to vector<16x256xf32>
    %137 = arith.mulf %134, %136 : vector<16x256xf32>
    %c16_104 = arith.constant 16 : index
    %c0_105 = arith.constant 0 : index
    %138 = vector.load %arg15[%c16_104, %c0_105] : memref<144x256xf32, #tpu.memory_space<vmem>>, vector<16x256xf32>
    tpu.vector_store %arg15[%c16_104, %c0_105], %137 {strides = array<i32>} : memref<144x256xf32, #tpu.memory_space<vmem>>, vector<16x256xf32>,
    %c0_106 = arith.constant 0 : index
    %c113_107 = arith.constant 113 : index
    %139 = vector.load %arg14[%c0_106, %c113_107] : memref<16x512xf32, #tpu.memory_space<vmem>>, vector<16x256xf32>
    %140 = vector.extract_strided_slice %2 {offsets = [2, 0], sizes = [1, 256], strides = [1, 1]} : vector<9x256xf32> to vector<1x256xf32>
    %141 = vector.broadcast %140 : vector<1x256xf32> to vector<16x256xf32>
    %142 = arith.mulf %139, %141 : vector<16x256xf32>
    %c32_108 = arith.constant 32 : index
    %c0_109 = arith.constant 0 : index
    %143 = vector.load %arg15[%c32_108, %c0_109] : memref<144x256xf32, #tpu.memory_space<vmem>>, vector<16x256xf32>
    tpu.vector_store %arg15[%c32_108, %c0_109], %142 {strides = array<i32>} : memref<144x256xf32, #tpu.memory_space<vmem>>, vector<16x256xf32>,
    %c0_110 = arith.constant 0 : index
    %c127_111 = arith.constant 127 : index
    %144 = vector.load %arg14[%c0_110, %c127_111] : memref<16x512xf32, #tpu.memory_space<vmem>>, vector<16x256xf32>
    %145 = vector.extract_strided_slice %2 {offsets = [3, 0], sizes = [1, 256], strides = [1, 1]} : vector<9x256xf32> to vector<1x256xf32>
    %146 = vector.broadcast %145 : vector<1x256xf32> to vector<16x256xf32>
    %147 = arith.mulf %144, %146 : vector<16x256xf32>
    %c48_112 = arith.constant 48 : index
    %c0_113 = arith.constant 0 : index
    %148 = vector.load %arg15[%c48_112, %c0_113] : memref<144x256xf32, #tpu.memory_space<vmem>>, vector<16x256xf32>
    tpu.vector_store %arg15[%c48_112, %c0_113], %147 {strides = array<i32>} : memref<144x256xf32, #tpu.memory_space<vmem>>, vector<16x256xf32>,
    %c0_114 = arith.constant 0 : index
    %c128_115 = arith.constant 128 : index
    %149 = vector.load %arg14[%c0_114, %c128_115] : memref<16x512xf32, #tpu.memory_space<vmem>>, vector<16x256xf32>
    %150 = vector.extract_strided_slice %2 {offsets = [4, 0], sizes = [1, 256], strides = [1, 1]} : vector<9x256xf32> to vector<1x256xf32>
    %151 = vector.broadcast %150 : vector<1x256xf32> to vector<16x256xf32>
    %152 = arith.mulf %149, %151 : vector<16x256xf32>
    %c64_116 = arith.constant 64 : index
    %c0_117 = arith.constant 0 : index
    %153 = vector.load %arg15[%c64_116, %c0_117] : memref<144x256xf32, #tpu.memory_space<vmem>>, vector<16x256xf32>
    tpu.vector_store %arg15[%c64_116, %c0_117], %152 {strides = array<i32>} : memref<144x256xf32, #tpu.memory_space<vmem>>, vector<16x256xf32>,
    %c0_118 = arith.constant 0 : index
    %c129_119 = arith.constant 129 : index
    %154 = vector.load %arg14[%c0_118, %c129_119] : memref<16x512xf32, #tpu.memory_space<vmem>>, vector<16x256xf32>
    %155 = vector.extract_strided_slice %2 {offsets = [5, 0], sizes = [1, 256], strides = [1, 1]} : vector<9x256xf32> to vector<1x256xf32>
    %156 = vector.broadcast %155 : vector<1x256xf32> to vector<16x256xf32>
    %157 = arith.mulf %154, %156 : vector<16x256xf32>
    %c80_120 = arith.constant 80 : index
    %c0_121 = arith.constant 0 : index
    %158 = vector.load %arg15[%c80_120, %c0_121] : memref<144x256xf32, #tpu.memory_space<vmem>>, vector<16x256xf32>
    tpu.vector_store %arg15[%c80_120, %c0_121], %157 {strides = array<i32>} : memref<144x256xf32, #tpu.memory_space<vmem>>, vector<16x256xf32>,
    %c0_122 = arith.constant 0 : index
    %c143_123 = arith.constant 143 : index
    %159 = vector.load %arg14[%c0_122, %c143_123] : memref<16x512xf32, #tpu.memory_space<vmem>>, vector<16x256xf32>
    %160 = vector.extract_strided_slice %2 {offsets = [6, 0], sizes = [1, 256], strides = [1, 1]} : vector<9x256xf32> to vector<1x256xf32>
    %161 = vector.broadcast %160 : vector<1x256xf32> to vector<16x256xf32>
    %162 = arith.mulf %159, %161 : vector<16x256xf32>
    %c96_124 = arith.constant 96 : index
    %c0_125 = arith.constant 0 : index
    %163 = vector.load %arg15[%c96_124, %c0_125] : memref<144x256xf32, #tpu.memory_space<vmem>>, vector<16x256xf32>
    tpu.vector_store %arg15[%c96_124, %c0_125], %162 {strides = array<i32>} : memref<144x256xf32, #tpu.memory_space<vmem>>, vector<16x256xf32>,
    %c0_126 = arith.constant 0 : index
    %c144_127 = arith.constant 144 : index
    %164 = vector.load %arg14[%c0_126, %c144_127] : memref<16x512xf32, #tpu.memory_space<vmem>>, vector<16x256xf32>
    %165 = vector.extract_strided_slice %2 {offsets = [7, 0], sizes = [1, 256], strides = [1, 1]} : vector<9x256xf32> to vector<1x256xf32>
    %166 = vector.broadcast %165 : vector<1x256xf32> to vector<16x256xf32>
    %167 = arith.mulf %164, %166 : vector<16x256xf32>
    %c112_128 = arith.constant 112 : index
    %c0_129 = arith.constant 0 : index
    %168 = vector.load %arg15[%c112_128, %c0_129] : memref<144x256xf32, #tpu.memory_space<vmem>>, vector<16x256xf32>
    tpu.vector_store %arg15[%c112_128, %c0_129], %167 {strides = array<i32>} : memref<144x256xf32, #tpu.memory_space<vmem>>, vector<16x256xf32>,
    %c0_130 = arith.constant 0 : index
    %c145_131 = arith.constant 145 : index
    %169 = vector.load %arg14[%c0_130, %c145_131] : memref<16x512xf32, #tpu.memory_space<vmem>>, vector<16x256xf32>
    %170 = vector.extract_strided_slice %2 {offsets = [8, 0], sizes = [1, 256], strides = [1, 1]} : vector<9x256xf32> to vector<1x256xf32>
    %171 = vector.broadcast %170 : vector<1x256xf32> to vector<16x256xf32>
    %172 = arith.mulf %169, %171 : vector<16x256xf32>
    %c128_132 = arith.constant 128 : index
    %c0_133 = arith.constant 0 : index
    %173 = vector.load %arg15[%c128_132, %c0_133] : memref<144x256xf32, #tpu.memory_space<vmem>>, vector<16x256xf32>
    tpu.vector_store %arg15[%c128_132, %c0_133], %172 {strides = array<i32>} : memref<144x256xf32, #tpu.memory_space<vmem>>, vector<16x256xf32>,
    %c0_134 = arith.constant 0 : index
    %c0_135 = arith.constant 0 : index
    %174 = vector.load %arg11[%c0_134, %c0_135] : memref<16x144xf32, #tpu.memory_space<vmem>>, vector<16x144xf32>
    %c0_136 = arith.constant 0 : index
    %c0_137 = arith.constant 0 : index
    %175 = vector.load %arg15[%c0_136, %c0_137] : memref<144x256xf32, #tpu.memory_space<vmem>>, vector<144x256xf32>
    %cst_138 = arith.constant dense<0.000000e+00> : vector<16x256xf32>
    %176 = tpu.matmul %174, %175, %cst_138 {dimension_numbers = #tpu.dot_dimension_numbers<[1], [0], [0], [1], [0, 0, 1, 1], [], []>} : vector<16x144xf32>, vector<144x256xf32>, vector<16x256xf32> -> vector<16x256xf32>
    %c0_139 = arith.constant 0 : index
    %c0_140 = arith.constant 0 : index
    %177 = vector.load %arg12[%c0_139, %c0_140] : memref<16x1xf32, #tpu.memory_space<vmem>>, vector<16x1xf32>
    %178 = vector.broadcast %177 : vector<16x1xf32> to vector<16x256xf32>
    %179 = arith.addf %176, %178 : vector<16x256xf32>
    %180 = arith.negf %179 : vector<16x256xf32>
    %181 = math.exp %180 : vector<16x256xf32>
    %cst_141 = arith.constant 1.000000e+00 : f32
    %182 = vector.broadcast %cst_141 : f32 to vector<16x256xf32>
    %183 = arith.addf %182, %181 : vector<16x256xf32>
    %184 = arith.divf %182, %183 : vector<16x256xf32>
    %cst_142 = arith.constant 1.000000e+00 : f32
    %185 = vector.broadcast %cst_142 : f32 to vector<16x256xf32>
    %186 = arith.subf %185, %184 : vector<16x256xf32>
    %187 = vector.broadcast %19 : vector<16x1xf32> to vector<16x256xf32>
    %188 = arith.mulf %186, %187 : vector<16x256xf32>
    %189 = arith.mulf %184, %1 : vector<16x256xf32>
    %190 = arith.addf %188, %189 : vector<16x256xf32>
    %c0_143 = arith.constant 0 : index
    %c0_144 = arith.constant 0 : index
    %c0_145 = arith.constant 0 : index
    %191 = vector.load %arg13[%c0_143, %c0_144, %c0_145] : memref<1x16x256xf32, #tpu.memory_space<vmem>>, vector<1x16x256xf32>
    %192 = vector.shape_cast %191 : vector<1x16x256xf32> to vector<16x256xf32>
    %193 = vector.shape_cast %190 : vector<16x256xf32> to vector<1x16x256xf32>
    tpu.vector_store %arg13[%c0_143, %c0_144, %c0_145], %193 {strides = array<i32>} : memref<1x16x256xf32, #tpu.memory_space<vmem>>, vector<1x16x256xf32>,
    return
  }
  func.func @transform_0(%arg0: i32) -> (i32, i32, i32) {
    %c0_i32 = arith.constant 0 : i32
    %c0_i32_0 = arith.constant 0 : i32
    %c0_i32_1 = arith.constant 0 : i32
    return %arg0, %c0_i32, %c0_i32_0 : i32, i32, i32
  }
  func.func @transform_1(%arg0: i32) -> (i32, i32) {
    %c0_i32 = arith.constant 0 : i32
    %c0_i32_0 = arith.constant 0 : i32
    %c0_i32_1 = arith.constant 0 : i32
    return %c0_i32, %c0_i32_0 : i32, i32
  }
  func.func @transform_2(%arg0: i32) -> (i32, i32) {
    %c0_i32 = arith.constant 0 : i32
    %c0_i32_0 = arith.constant 0 : i32
    %c0_i32_1 = arith.constant 0 : i32
    return %c0_i32, %c0_i32_0 : i32, i32
  }
  func.func @transform_3(%arg0: i32) -> (i32, i32) {
    %c0_i32 = arith.constant 0 : i32
    %c0_i32_0 = arith.constant 0 : i32
    %c0_i32_1 = arith.constant 0 : i32
    return %c0_i32, %c0_i32_0 : i32, i32
  }
  func.func @transform_4(%arg0: i32) -> (i32, i32) {
    %c0_i32 = arith.constant 0 : i32
    %c0_i32_0 = arith.constant 0 : i32
    %c0_i32_1 = arith.constant 0 : i32
    return %c0_i32, %c0_i32_0 : i32, i32
  }
  func.func @transform_5(%arg0: i32) -> (i32, i32) {
    %c0_i32 = arith.constant 0 : i32
    %c0_i32_0 = arith.constant 0 : i32
    %c0_i32_1 = arith.constant 0 : i32
    return %c0_i32, %c0_i32_0 : i32, i32
  }
  func.func @transform_6(%arg0: i32) -> (i32, i32) {
    %c0_i32 = arith.constant 0 : i32
    %c0_i32_0 = arith.constant 0 : i32
    %c0_i32_1 = arith.constant 0 : i32
    return %c0_i32, %c0_i32_0 : i32, i32
  }
  func.func @transform_7(%arg0: i32) -> (i32, i32) {
    %c0_i32 = arith.constant 0 : i32
    %c0_i32_0 = arith.constant 0 : i32
    %c0_i32_1 = arith.constant 0 : i32
    return %c0_i32, %c0_i32_0 : i32, i32
  }
  func.func @transform_8(%arg0: i32) -> (i32, i32) {
    %c0_i32 = arith.constant 0 : i32
    %c0_i32_0 = arith.constant 0 : i32
    %c0_i32_1 = arith.constant 0 : i32
    return %c0_i32, %c0_i32_0 : i32, i32
  }
  func.func @transform_9(%arg0: i32) -> (i32, i32) {
    %c0_i32 = arith.constant 0 : i32
    %c0_i32_0 = arith.constant 0 : i32
    %c0_i32_1 = arith.constant 0 : i32
    return %c0_i32, %c0_i32_0 : i32, i32
  }
  func.func @transform_10(%arg0: i32) -> (i32, i32) {
    %c0_i32 = arith.constant 0 : i32
    %c0_i32_0 = arith.constant 0 : i32
    %c0_i32_1 = arith.constant 0 : i32
    return %c0_i32, %c0_i32_0 : i32, i32
  }
  func.func @transform_11(%arg0: i32) -> (i32, i32) {
    %c0_i32 = arith.constant 0 : i32
    %c0_i32_0 = arith.constant 0 : i32
    %c0_i32_1 = arith.constant 0 : i32
    return %c0_i32, %c0_i32_0 : i32, i32
  }
  func.func @transform_12(%arg0: i32) -> (i32, i32, i32) {
    %c0_i32 = arith.constant 0 : i32
    %c0_i32_0 = arith.constant 0 : i32
    %c0_i32_1 = arith.constant 0 : i32
    return %arg0, %c0_i32, %c0_i32_0 : i32, i32, i32
  }
}

</mosaic_0001>

<bundles_post_ra>
// kernel: tpu_custom_call.1
= control target key start
LH: loop header
LB: loop body
LE: loop exit
PB: predicated region body
PF: predicated region fallthrough
CT: control target
= control target key end

     0   :  { %s4339_s0 = inlined_call_operand.vmem [shape: f32[2,16,256], index: 0, kind: input, shape index: {}]   ;;  %s4340_s1 = inlined_call_operand.vmem [shape: f32[9,256], index: 1, kind: input, shape index: {}]   ;;  %s4341_s2 = inlined_call_operand.hbm [shape: f32[4,16], index: 2, kind: input, shape index: {}]   ;;  %s4342_s3 = inlined_call_operand.vmem [shape: f32[4,1], index: 3, kind: input, shape index: {}]   ;;  %s4343_s4 = inlined_call_operand.vmem [shape: f32[16,4], index: 4, kind: input, shape index: {}]   ;;  %s4344_s5 = inlined_call_operand.vmem [shape: f32[16,1], index: 5, kind: input, shape index: {}]   ;;  %s4345_s6 = inlined_call_operand.hbm [shape: f32[16,144], index: 6, kind: input, shape index: {}]   ;;  %s4346_s7 = inlined_call_operand.vmem [shape: f32[16,1], index: 7, kind: input, shape index: {}]   ;;  %s4347_s8 = inlined_call_operand.hbm [shape: f32[16,144], index: 8, kind: input, shape index: {}]   ;;  %s4348_s9 = inlined_call_operand.vmem [shape: f32[16,1], index: 9, kind: input, shape index: {}]   ;;  %s4349_s10 = inlined_call_operand.vmem [shape: f32[16,144], index: 10, kind: input, shape index: {}]   ;;  %s4350_s11 = inlined_call_operand.vmem [shape: f32[16,1], index: 11, kind: input, shape index: {}]   ;;  %s4351_s12 = inlined_call_operand.hbm [shape: f32[2,16,256], index: 12, kind: output, shape index: {}]  }
   0x1   :  { %4364 = sst [smem:[#allocation21_spill]] %s4351_s12 }
   0x2   :  { %17 = vsyncpa [#allocation5], 0 }
   0x3   :  { %18 = vsyncpa [#allocation8], 0 }
   0x4   :  { %19 = vsyncpa [#allocation6], 0 }
   0x5   :  { %21 = vsyncpa [#allocation6 + $0x1], 0  ;;  %s3447_s21 = smov 0   ;;  %s3449_s22 = smov 0  }
   0x6   :  { %s3451_s23 = smov 0   ;;  %s3453_s24 = smov 0  }
   0x7 LB: > { %4365 = sst [smem:[#allocation14_spill]] %s3348_s21  ;;  %s3468_s25 = sadd.s32 4294967295, %s3360_s24   ;;  %s3360_s24 = sphi %s3453_s24, %s4390_s24   ;;  %s3356_s23 = sphi %s3451_s23, %s4392_s23   ;;  %s3352_s22 = sphi %s3449_s22, %s4394_s22   ;;  %s3348_s21 = sphi %s3447_s21, %s4393_s21  }
   0x8   : > { %4366 = sst [smem:[#allocation15_spill]] %s3356_s23  ;;  %s2509_s26 = sadd.s32 4294967294, %s3360_s24  }
   0x9   : > { %4367 = sst [smem:[#allocation16_spill]] %s3360_s24  ;;  %s3472_s27 = sadd.s32 1, %s3360_s24  }
   0xa   : > { %4368 = sst [smem:[#allocation17_spill]] %s3472_s27  ;;  %s291_s28 = sadd.s32 1, %s3356_s23 }
   0xb   : > { %s288_s29 = ssub.s32 %s3360_s24, %s3472_s27  ;;  %p301_p0 = scmp.ne.s32.totalorder %s3356_s23, %s3352_s22 }
   0xc   : > { %p289_p1 = scmp.eq.s32.totalorder %s288_s29, 0  ;;  %p302_p2 = scmp.eq.s32.totalorder %s3468_s25, 1 }
   0xd   : > { %p307_p3 = scmp.ne.s32.totalorder %s3352_s22, %s3348_s21  ;;  %p308_p4 = scmp.eq.s32.totalorder %s2509_s26, 1 }
   0xe   : > { %s3483_s30 = scalar_select %p289_p1, %s3356_s23, %s291_s28  }
   0xf   : > { %p3485_p5 = por %p302_p2, %p301_p0  ;;  %p3489_p6 = por %p308_p4, %p307_p3 }
  0x10   : > { %4369 = sst [smem:[#allocation18_spill]] %s3483_s30  ;;  %p2510_p7 = scmp.ge.s32.totalorder %s3360_s24, 1 }
  0x11   : > { %s4370_s13 = scalar_select %p3485_p5, 1, 0 }
  0x12   : > { %s4372_s14 = scalar_select %p3489_p6, 1, 0 }
  0x13   : > { %4371 = sst [smem:[#allocation19_spill]] %s4370_s13  ;;  %p315_p8 = scmp.lt.s32.totalorder %s3360_s24, 3 }
  0x14   : > { %4373 = sst [smem:[#allocation20_spill]] %s4372_s14  ;;  %p4356_p9 = scmp.eq.s32.totalorder %s3468_s25, 0 }
  0x15   : > { %p3496_p10 = pnand %p2510_p7, %p315_p8  ;;  %s3362_s16 = smov [#allocation7]  }
  0x16   : > { %s350_s17 = sshll.u32 %s3362_s16, 4  ;;  %s3363_s19 = smov [#allocation4]   ;;  %s3502_s17 = int_to_ptr.vmem [resolvable:$true] %s350_s17 }
  0x17   : > { %s4374_s15 = scalar_select %p3496_p10, 1, 0 }
  0x18   : > { %p2744_p11 = pneg %p3496_p10  ;;  %s331_s20 = sshll.u32 %s3363_s19, 4  ;;  %s3510_s20 = int_to_ptr.vmem [resolvable:$true] %s331_s20 }
  0x19   : > { %s3364_s26 = smov [#allocation9]   ;;  %s3206_s16 = scalar_lea.hbm %s4345_s6, 512 }
  0x1a   : > { %p3506_p12 = pnand %p4356_p9, %p2744_p11  ;;  %s3512_s28 = sshll.u32 %s3364_s26, 4  ;;  %s367_s28 = int_to_ptr.vmem [resolvable:$true] %s3512_s28 }
  0x1b   : > { %p3207_p13 = scmp.ne.s32.totalorder %s4345_s6, %s3206_s16  ;;  %p3213_p3 = scmp.lt.u32.totalorder %s3206_s16, %s4345_s6 }
  0x1c   : > { %p3522_p0 = pneg %p3506_p12 }
  0x1e   : > { %p3209_p1 = pnand %p3522_p0, %p3207_p13 }
  0x20   : > { %p3210_p2 = pneg %p3209_p1 }
  0x22   : > { %p3215_p4 = pnand %p3213_p3, %p3210_p2 }
  0x24   : > { %3218 = shalt.err (!%p3215_p4)
}
  0x25   : > { %s3219_s23 = scalar_lea.vmem %s3502_s17, 512  ;;  %p3227_p9 = scmp.lt.s32.totalorder %s3502_s17, %s3502_s17 }
  0x26   : > { %p3220_p7 = scmp.ne.s32.totalorder %s3502_s17, %s3219_s23  ;;  %p3228_p6 = scmp.lt.s32.totalorder %s3219_s23, %s3219_s23 }
  0x28   : > { %p3222_p8 = pnand %p3220_p7, %p3522_p0  ;;  %p3229_p13 = por %p3228_p6, %p3227_p9 }
  0x2a   : > { %p3223_p11 = pneg %p3222_p8 }
  0x2c   : > { %p3230_p1 = pnand %p3229_p13, %p3223_p11 }
  0x2e   : > { %3233 = shalt.err (!%p3230_p1)
}
  0x2f   : > { %s3365_s27 = smov 256   ;;  %s3366_s30 = smov 16  }
  0x30   : > { %2750 = dma.hbm_to_vmem [thread:$0]  (!%p3506_p12), %s4345_s6, 512, %s3502_s17, [#allocation8], %s3365_s27, %s3365_s27, %s3366_s30  }
  0x31   : > { %s3234_s23 = scalar_lea.hbm %s4341_s2, 64 }
  0x32   : > { %p3235_p6 = scmp.ne.s32.totalorder %s4341_s2, %s3234_s23  ;;  %p3241_p3 = scmp.lt.u32.totalorder %s3234_s23, %s4341_s2 }
  0x34   : > { %p3237_p9 = pnand %p3235_p6, %p3522_p0 }
  0x36   : > { %p3238_p2 = pneg %p3237_p9 }
  0x38   : > { %p3243_p4 = pnand %p3241_p3, %p3238_p2 }
  0x3a   : > { %3246 = shalt.err (!%p3243_p4)
}
  0x3b   : > { %s3247_s17 = scalar_lea.vmem %s3510_s20, 64  ;;  %p3255_p13 = scmp.lt.s32.totalorder %s3510_s20, %s3510_s20 }
  0x3c   : > { %p3248_p7 = scmp.ne.s32.totalorder %s3510_s20, %s3247_s17  ;;  %p3256_p1 = scmp.lt.s32.totalorder %s3247_s17, %s3247_s17 }
  0x3e   : > { %p3250_p8 = pnand %p3248_p7, %p3522_p0  ;;  %p3257_p6 = por %p3256_p1, %p3255_p13 }
  0x40   : > { %p3251_p11 = pneg %p3250_p8 }
  0x42   : > { %p3258_p9 = pnand %p3257_p6, %p3251_p11 }
  0x44   : > { %3261 = shalt.err (!%p3258_p9)
}
  0x45   : > { %2747 = dma.hbm_to_vmem [thread:$0]  (!%p3506_p12), %s4341_s2, 64, %s3510_s20, [#allocation5]  }
  0x46   : > { %s3262_s29 = scalar_lea.hbm %s4347_s8, 512 }
  0x47   : > { %p3263_p2 = scmp.ne.s32.totalorder %s4347_s8, %s3262_s29  ;;  %p3269_p7 = scmp.lt.u32.totalorder %s3262_s29, %s4347_s8 }
  0x49   : > { %p3265_p3 = pnand %p3263_p2, %p3522_p0 }
  0x4b   : > { %p3266_p4 = pneg %p3265_p3 }
  0x4d   : > { %p3271_p8 = pnand %p3269_p7, %p3266_p4 }
  0x4f   : > { %3274 = shalt.err (!%p3271_p8)
}
  0x50   : > { %s3275_s17 = scalar_lea.vmem %s367_s28, 512  ;;  %p3283_p6 = scmp.lt.s32.totalorder %s367_s28, %s367_s28 }
  0x51   : > { %p3276_p11 = scmp.ne.s32.totalorder %s367_s28, %s3275_s17  ;;  %p3284_p9 = scmp.lt.s32.totalorder %s3275_s17, %s3275_s17 }
  0x53   : > { %p3278_p13 = pnand %p3276_p11, %p3522_p0  ;;  %p3285_p5 = por %p3284_p9, %p3283_p6 }
  0x55   : > { %p3279_p1 = pneg %p3278_p13 }
  0x57   : > { %p3286_p10 = pnand %p3285_p5, %p3279_p1 }
  0x59   : > { %3289 = shalt.err (!%p3286_p10)
}
  0x5a   : > { %2753 = dma.hbm_to_vmem [thread:$0]  (!%p3506_p12), %s4347_s8, 512, %s367_s28, [#allocation8], %s3365_s27, %s3365_s27, %s3366_s30  }
  0x5b   : > { %p4377_p2 = scmp.ne.s32.totalorder %s4374_s15, 0 }
  0x5c   : > { %p4378_p0 = scmp.eq.s32.totalorder (!%p4377_p2), %s3468_s25, 0 }
  0x5d   : > { %399 = sbr.rel (%p4377_p2) target bundleno = 1647 (0x66f), region = 68 }
  0x64   : > { %3335 = dma.done.wait (%p4378_p0), [#allocation5], 64   ;;  %p4379_p3 = pmov %p4378_p0 }
  0x65   : > { %p4380_p5 = pmov %p4378_p0 }
  0x66   : > { %3337 = vsyncadd (%p4379_p3), [#allocation5], 4294967232 }
  0x67   : > { %3339 = dma.done.wait (%p4380_p5), [#allocation8], 1024   ;;  %p4381_p10 = pmov %p4378_p0 }
  0x68   : > { %p449_p4 = scmp.lt.s32.totalorder %s3468_s25, 1  ;;  %v734_v0 = vlaneseq  ;;  %v3367_v1 = vmov 0.00390625|0.00390625   ;;  %v3619_v6 = vld [vmem:[%s4340_s1] sm:$0xff]  ;;  %v3624_v7 = vld [vmem:[%s4340_s1 + $0x8] sm:$0xff]  ;;  %s3368_s29 = smov 111  }
  0x69   : > { %3341 = vsyncadd (%p4381_p10), [#allocation8], 4294966272  ;;  %2603 = vmatprep.subr.bf16.mxu0 %v3367_v1  ;;  %s3369_s16 = smov 112   ;;  %s3370_s19 = smov 113   ;;  %v2528_v30 = vld [vmem:[%s4340_s1 + $0x10] ss:$0 sm:$0xff] }
  0x6a   : > { %2604 = vmatpush3.bf16.msra.mxu0 %v3367_v1  ;;  %s450_s14 = scalar_select %p449_p4, %s3468_s25, 1  ;;  %v3603_v2 = vshrl.u32 %v734_v0, 7  ;;  %v2529_v31 = vld [vmem:[%s4340_s1 + $0x18] ss:$0 sm:$0xff]  ;;  %v3376_v32 = vmov 0.0|0.0   ;;  %vm3377_vm0 = vmmov 0  }
  0x6b   : > { %2605 = vmatprep.subr.bf16.mxu0 %v3367_v1  ;;  %s3371_s26 = smov 127   ;;  %s3372_s23 = smov 1   ;;  %v3378_v33 = vmov 0.0   ;;  %v3379_v40 = vmov 0   ;;  %vm748_vm1 = vcmask 908288   ;;  %vm810_vm2 = vcmask 916480  }
  0x6c   : > { %s2545_s15 = sshll.u32 %s450_s14, 5  ;;  %v736_v3 = vsub.s32 0, %v3603_v2  ;;  %v798_v4 = vsub.s32 1, %v3603_v2  ;;  %v859_v11 = vsub.s32 2, %v3603_v2  ;;  %v921_v14 = vsub.s32 3, %v3603_v2  ;;  %s3373_s17 = smov 15   ;;  %2937 = vset.pattern.permute.xlu1 %v3379_v40  ;;  %2936 = vset.pattern.permute.xlu0 %v3379_v40 }
  0x6d   : > { %s3608_s27 = scalar_lea.vmem %s4339_s0, %s2545_s15  ;;  %v1003_v17 = vsub.s32 5, %v3603_v2  ;;  %v1063_v20 = vsub.s32 6, %v3603_v2  ;;  %v1123_v23 = vsub.s32 7, %v3603_v2  ;;  %s3374_s20 = smov 16   ;;  %vm871_vm3 = vcmask 924672  }
  0x6e   : > { %2606 = vmatpush3.bf16.msra.mxu0 %v3367_v1  ;;  %v3613_v5 = vld [vmem:[%s3608_s27 + $0x8] sm:$0xff]  ;;  %v737_v8 = vrot.slane %v3619_v6, %v736_v3  ;;  %v799_v9 = vrot.slane %v3619_v6, %v798_v4  ;;  %v741_v10 = vrot.slane %v3624_v7, %v736_v3  ;;  %v803_v12 = vrot.slane %v3624_v7, %v798_v4  ;;  %v3654_v25 = vld [vmem:[%s3608_s27] sm:$0xff]  ;;  %v3657_v26 = vld [vmem:[%s3608_s27 + $0x18] sm:$0xff]  ;;  %s3375_s28 = smov 17   ;;  %s446_s18 = sand.u32 1, %s3352_s22  }
  0x6f   : > { %2607 = vmatprep.subr.bf16.mxu0 %v3367_v1  ;;  %526 = vmatprep.mubr.f32.mxu0 %v3613_v5  ;;  %v860_v13 = vrot.slane %v3619_v6, %v859_v11  ;;  %v864_v15 = vrot.slane %v3624_v7, %v859_v11  ;;  %v922_v16 = vrot.slane %v3619_v6, %v921_v14  ;;  %v3666_v29 = vld [vmem:[%s3608_s27 + $0x10] sm:$0xff]  ;;  %vm933_vm4 = vcmask 1039360   ;;  %s2546_s30 = sshll.u32 %s3468_s25, 9  ;;  %s4383_s21 = sld [smem:[#allocation21_spill]] }
  0x70   : > { %744 = vrot.lane.b32.xlu0 %v737_v8, %s3368_s29  ;;  %806 = vrot.lane.b32.xlu1 %v799_v9, %s3369_s16  ;;  %v926_v18 = vrot.slane %v3624_v7, %v921_v14  ;;  %v1004_v19 = vrot.slane %v3619_v6, %v1003_v17  ;;  %v1008_v21 = vrot.slane %v3624_v7, %v1003_v17  ;;  %vm962_vm5 = vcmask 7168   ;;  %s4297_s25 = scalar_lea.sflag [#allocation6], %s446_s18 }
  0x71   : > { %v1064_v22 = vrot.slane %v3619_v6, %v1063_v20  ;;  %v1068_v24 = vrot.slane %v3624_v7, %v1063_v20  ;;  %v1124_v27 = vrot.slane %v3619_v6, %v1123_v23  ;;  %v1128_v28 = vrot.slane %v3624_v7, %v1123_v23 }
  0x72   : > { %2608 = vmatpush3.bf16.msra.mxu0 %v3367_v1  ;;  %vm900_vm6 = vcmask 121856   ;;  %vm539_vm7 = vcmask 130048   ;;  %vm777_vm8 = vcmask 138240   ;;  %vm618_vm9 = vcmask 31744  }
  0x73   : > { %2609 = vmatprep.subr.bf16.mxu0 %v3367_v1  ;;  %vm625_vm10 = vcmask 1043456  }
  0x74   : > { %746 = vrot.lane.b32.xlu0 %v741_v10, %s3368_s29  ;;  %808 = vrot.lane.b32.xlu1 %v803_v12, %s3369_s16 }
  0x75   : > { %s4291_s24 = scalar_lea.hbm %s4383_s21, %s2546_s30 }
  0x76   : > { %2610 = vmatpush3.bf16.msra.mxu0 %v3367_v1 }
  0x77   : > { %2611 = vmatprep.subr.bf16.mxu0 %v3367_v1 }
  0x78   : > { %867 = vrot.lane.b32.xlu0 %v860_v13, %s3370_s19  ;;  %869 = vrot.lane.b32.xlu1 %v864_v15, %s3370_s19 }
  0x7a   : > { %2612 = vmatpush3.bf16.msra.mxu0 %v3367_v1 }
  0x7b   : > { %2613 = vmatprep.subr.bf16.mxu0 %v3367_v1 }
  0x7c   : > { %929 = vrot.lane.b32.xlu0 %v922_v16, %s3371_s26  ;;  %931 = vrot.lane.b32.xlu1 %v926_v18, %s3371_s26 }
  0x7e   : > { %2614 = vmatpush3.bf16.msra.mxu0 %v3367_v1 }
  0x7f   : > { %2615 = vmatprep.subr.bf16.mxu0 %v3367_v1 }
  0x80   : > { %1011 = vrot.lane.b32.xlu0 %v1004_v19, %s3372_s23  ;;  %1013 = vrot.lane.b32.xlu1 %v1008_v21, %s3372_s23 }
  0x82   : > { %2616 = vmatpush3.bf16.msra.mxu0 %v3367_v1 }
  0x83   : > { %2617 = vmatprep.subr.bf16.mxu0 %v3367_v1 }
  0x84   : > { %1071 = vrot.lane.b32.xlu0 %v1064_v22, %s3373_s17  ;;  %1073 = vrot.lane.b32.xlu1 %v1068_v24, %s3373_s17 }
  0x86   : > { %2618 = vmatpush3.bf16.msra.mxu0 %v3367_v1 }
  0x87   : > { %2619 = vmatprep.subr.bf16.mxu0 %v3376_v32 }
  0x88   : > { %1131 = vrot.lane.b32.xlu0 %v1124_v27, %s3374_s20  ;;  %1133 = vrot.lane.b32.xlu1 %v1128_v28, %s3374_s20 }
  0x89   : > { %527 = vmatmul.mubr.f32.vlgmr.msra.gmra.mrb[0].mxu0 %v3654_v25 }
  0x8a   : > { %531 = vmatprep.mubr.f32.mxu0 %v3657_v26 }
  0x8c   : > { %1191 = vrot.lane.b32.xlu0 %v2528_v30, %s3375_s28  ;;  %1193 = vrot.lane.b32.xlu1 %v2529_v31, %s3375_s28 }
  0x8d   : > { %532 = vmatmul.mubr.f32.gmra.mrb[2].mxu0 %v3666_v29 }
  0x8e   : > { %2595 = vmatprep.mubr.msk.f32.mxu0 %vm3377_vm0, %v3378_v33 }
  0xe2   : > { %v745_v34 = vpop.permute.xlu0 %744  ;;  %v807_v35 = vpop.permute.xlu1 %806 }
  0xe3   : > { %v753_v36 = vmul.f32 0.0, %v745_v34  ;;  %v815_v37 = vmul.f32 0.0, %v807_v35 }
  0xe5   : > { %v3679_v38 = vpack.i.bf16 %v815_v37, %v815_v37  ;;  %v3681_v39 = vpack.i.bf16 %v753_v36, %v753_v36 }
  0xe6   : > { %v3683_v41 = vpop.permute.xlu0 %746  ;;  %v3687_v42 = vpop.permute.xlu1 %808 }
  0xe7   : > { %2822 = vrot.lane.b32.xlu1 %v3679_v38, %s3374_s20  ;;  %2817 = vrot.lane.b32.xlu0 %v3681_v39, %s3375_s28  ;;  %v3693_v45 = vsel %vm748_vm1, %v745_v34, %v3683_v41  ;;  %v758_v51 = vmul.f32 %v3683_v41, %v3657_v26  ;;  %v3705_v52 = vsel %vm810_vm2, %v807_v35, %v3687_v42 }
  0xe8   : > { %v757_v50 = vmul.f32 %v3693_v45, %v3666_v29  ;;  %v816_v55 = vmul.f32 %v3705_v52, %v3654_v25  ;;  %v817_v56 = vmul.f32 %v3687_v42, %v3613_v5  ;;  %v754_v57 = vmul.f32 %v3693_v45, %v3654_v25 }
  0xe9   : > { %v755_v62 = vmul.f32 %v3683_v41, %v3613_v5  ;;  %v819_v4 = vmul.f32 %v3705_v52, %v3666_v29  ;;  %v820_v8 = vmul.f32 %v3687_v42, %v3657_v26 }
  0xea   : > { %v868_v43 = vpop.permute.xlu0 %867  ;;  %v3695_v46 = vpop.permute.xlu1 %869  ;;  %v2846_v58 = vpack.i.bf16 %v758_v51, %v757_v50  ;;  %v2851_v1 = vpack.i.bf16 %v817_v56, %v816_v55 }
  0xeb   : > { %v876_v44 = vmul.f32 0.0, %v868_v43  ;;  %v3731_v63 = vsel %vm871_vm3, %v868_v43, %v3695_v46  ;;  %v881_v3 = vmul.f32 %v3695_v46, %v3657_v26  ;;  %v2841_v11 = vpack.i.bf16 %v755_v62, %v754_v57 }
  0xec   : > { %v880_v9 = vmul.f32 %v3731_v63, %v3666_v29  ;;  %v877_v15 = vmul.f32 %v3731_v63, %v3654_v25  ;;  %v878_v16 = vmul.f32 %v3695_v46, %v3613_v5  ;;  %v2856_v18 = vpack.i.bf16 %v820_v8, %v819_v4 }
  0xed   : > { %v3697_v47 = vpack.i.bf16 %v876_v44, %v876_v44 }
  0xee   : > { %v930_v48 = vpop.permute.xlu0 %929  ;;  %v3721_v59 = vpop.permute.xlu1 %931  ;;  %v2866_v17 = vpack.i.bf16 %v881_v3, %v880_v9  ;;  %v2861_v22 = vpack.i.bf16 %v878_v16, %v877_v15 }
  0xef   : > { %v938_v49 = vmul.f32 0.0, %v930_v48  ;;  %2827 = vrot.lane.b32.xlu0 %v3697_v47, %s3373_s17  ;;  %v3745_v10 = vsel %vm933_vm4, %v930_v48, %v3721_v59  ;;  %v940_v14 = vmul.f32 %v3721_v59, %v3613_v5  ;;  %v943_v24 = vmul.f32 %v3721_v59, %v3657_v26 }
  0xf0   : > { %v939_v13 = vmul.f32 %v3745_v10, %v3654_v25  ;;  %v942_v23 = vmul.f32 %v3745_v10, %v3666_v29 }
  0xf1   : > { %v3709_v53 = vpack.i.bf16 %v938_v49, %v938_v49 }
  0xf2   : > { %v3711_v54 = vpop.permute.xlu0 %1011  ;;  %v1014_v12 = vpop.permute.xlu1 %1013  ;;  %v2871_v21 = vpack.i.bf16 %v940_v14, %v939_v13  ;;  %v2881_v33 = vpack.i.bf16 %v943_v24, %v942_v23 }
  0xf3   : > { %2832 = vrot.lane.b32.xlu1 %v3709_v53, %s3372_s23  ;;  %v1019_v60 = vmul.f32 %v3711_v54, %v3654_v25  ;;  %v1022_v61 = vmul.f32 %v3711_v54, %v3666_v29  ;;  %v3766_v27 = vsel %vm962_vm5, %v3711_v54, %v1014_v12  ;;  %v3778_v34 = vmul.f32 0.0, %v1014_v12 }
  0xf4   : > { %v1023_v31 = vmul.f32 %v3766_v27, %v3657_v26  ;;  %v1020_v44 = vmul.f32 %v3766_v27, %v3613_v5 }
  0xf5   : > { %v2836_v0 = vpack.i.bf16 %v1022_v61, %v1019_v60 }
  0xf6   : > { %v3757_v19 = vpop.permute.xlu0 %1071  ;;  %v1074_v20 = vpop.permute.xlu1 %1073  ;;  %v2896_v49 = vpack.i.bf16 %v3778_v34, %v1023_v31 }
  0xf7   : > { %2847 = vrot.lane.b32.xlu1 %v2846_v58, %s3375_s28  ;;  %2837 = vrot.lane.b32.xlu0 %v2836_v0, %s3371_s26  ;;  %v1079_v28 = vmul.f32 %v3757_v19, %v3654_v25  ;;  %v1082_v30 = vmul.f32 %v3757_v19, %v3666_v29  ;;  %v3787_v43 = vsel %vm900_vm6, %v3757_v19, %v1074_v20  ;;  %v3792_v48 = vmul.f32 0.0, %v1074_v20  ;;  %v1276_v20 = vld [vmem:[%s4346_s7 + $0x8] sm:$0xff] }
  0xf8   : > { %v1080_v50 = vmul.f32 %v3787_v43, %v3613_v5  ;;  %v2891_v58 = vpack.i.bf16 %v3778_v34, %v1020_v44  ;;  %v1083_v0 = vmul.f32 %v3787_v43, %v3657_v26 }
  0xf9   : > { %v2876_v35 = vpack.i.bf16 %v1082_v30, %v1079_v28 }
  0xfa   : > { %v3775_v32 = vpop.permute.xlu0 %1131  ;;  %v1134_v36 = vpop.permute.xlu1 %1133  ;;  %v2901_v61 = vpack.i.bf16 %v3792_v48, %v1080_v50 }
  0xfb   : > { %2852 = vrot.lane.b32.xlu1 %v2851_v1, %s3374_s20  ;;  %2842 = vrot.lane.b32.xlu0 %v2841_v11, %s3375_s28  ;;  %v1139_v37 = vmul.f32 %v3775_v32, %v3654_v25  ;;  %v1142_v40 = vmul.f32 %v3775_v32, %v3666_v29  ;;  %v3800_v55 = vsel %vm539_vm7, %v3775_v32, %v1134_v36  ;;  %v3806_v60 = vmul.f32 0.0, %v1134_v36  ;;  %v614_v36 = vld [vmem:[%s4343_s4] sm:$0xff] }
  0xfc   : > { %v1143_v62 = vmul.f32 %v3800_v55, %v3657_v26  ;;  %v1140_v3 = vmul.f32 %v3800_v55, %v3613_v5  ;;  %v2906_v11 = vpack.i.bf16 %v3792_v48, %v1083_v0  ;;  %2600 = vmatprep.mubr.msk.f32.mxu1 %vm618_vm9, %v614_v36 }
  0xfd   : > { %v2886_v51 = vpack.i.bf16 %v1142_v40, %v1139_v37 }
  0xfe   : > { %v1194_v56 = vpop.permute.xlu1 %1193  ;;  %v3802_v57 = vpop.permute.xlu0 %1191  ;;  %v2916_v8 = vpack.i.bf16 %v3806_v60, %v1143_v62  ;;  %v2911_v13 = vpack.i.bf16 %v3806_v60, %v1140_v3 }
  0xff   : > { %2867 = vrot.lane.b32.xlu1 %v2866_v17, %s3373_s17  ;;  %2857 = vrot.lane.b32.xlu0 %v2856_v18, %s3374_s20  ;;  %v3816_v1 = vsel %vm777_vm8, %v3802_v57, %v1194_v56  ;;  %v3821_v4 = vmul.f32 0.0, %v1194_v56  ;;  %v1199_v12 = vmul.f32 %v3802_v57, %v3654_v25  ;;  %v1202_v15 = vmul.f32 %v3802_v57, %v3666_v29 }
 0x100   : > { %v1200_v9 = vmul.f32 %v3816_v1, %v3613_v5  ;;  %v1203_v16 = vmul.f32 %v3816_v1, %v3657_v26 }
 0x101   : > { %v2931_v17 = vpack.i.bf16 %v1202_v15, %v1199_v12  ;;  %v538_v15 = vld [vmem:[%s4342_s3] sm:$0xf] }
 0x102   : > { %v2921_v14 = vpack.i.bf16 %v3821_v4, %v1200_v9  ;;  %v2926_v18 = vpack.i.bf16 %v3821_v4, %v1203_v16 }
 0x103   : > { %2872 = vrot.lane.b32.xlu1 %v2871_v21, %s3372_s23  ;;  %2862 = vrot.lane.b32.xlu0 %v2861_v22, %s3373_s17  ;;  %v1275_v21 = vld [vmem:[%s4346_s7] sm:$0xff] }
 0x107   : > { %2877 = vrot.lane.b32.xlu1 %v2876_v35, %s3370_s19  ;;  %2882 = vrot.lane.b32.xlu0 %v2881_v33, %s3372_s23  ;;  %v537_v35 = vld [vmem:[#allocation4] sm:$0xf] }
 0x10b   : > { %2897 = vrot.lane.b32.xlu1 %v2896_v49, %s3371_s26  ;;  %2887 = vrot.lane.b32.xlu0 %v2886_v51, %s3369_s16 }
 0x10f   : > { %2902 = vrot.lane.b32.xlu1 %v2901_v61, %s3370_s19  ;;  %2892 = vrot.lane.b32.xlu0 %v2891_v58, %s3371_s26 }
 0x113   : > { %2917 = vrot.lane.b32.xlu1 %v2916_v8, %s3369_s16  ;;  %2907 = vrot.lane.b32.xlu0 %v2906_v11, %s3370_s19 }
 0x117   : > { %2922 = vrot.lane.b32.xlu1 %v2921_v14, %s3368_s29  ;;  %2912 = vrot.lane.b32.xlu0 %v2911_v13, %s3369_s16 }
 0x11b   : > { %2932 = vrot.lane.b32.xlu1 %v2931_v17, %s3368_s29  ;;  %2927 = vrot.lane.b32.xlu0 %v2926_v18, %s3368_s29 }
 0x11f   : > { %1284 = vperm.xlu1 %2937, %v1276_v20   ;;  %1279 = vperm.xlu0 %2936, %v1275_v21  }
 0x123   : > { %2939 = vrot.lane.b32.xlu1 %v3681_v39, %s3375_s28  ;;  %2944 = vrot.lane.b32.xlu0 %v3679_v38, %s3374_s20 }
 0x127   : > { %2949 = vrot.lane.b32.xlu1 %v3697_v47, %s3373_s17 }
 0x159   : > { %v2818_v37 = vpop.permute.xlu0 %2817  ;;  %v2823_v40 = vpop.permute.xlu1 %2822 }
 0x15a   : > { %v2820_v8 = vunpack.i.h.bf16 %v2818_v37  ;;  %v2819_v16 = vunpack.i.l.bf16 %v2818_v37 }
 0x15c   : > { %v2579_v22 = vpop.f32.mrb[0].mxu0 }
 0x15d   : > { %v2580_v23 = vpop.f32.mrb[1].mxu0 }
 0x15e   : > { %v2581_v24 = vadd.f32 %v2580_v23, %v2579_v22 }
 0x160   : > { %v2582_v28 = vpop.f32.mrb[2].mxu0 }
 0x161   : > { %v2583_v30 = vpop.f32.mrb[3].mxu0  ;;  %v3860_v44 = vpop.permute.xlu0 %2827 }
 0x162   : > { %v2584_v31 = vadd.f32 %v2583_v30, %v2582_v28  ;;  %v2824_v28 = vunpack.i.l.bf16 %v2823_v40 }
 0x164   : > { %v2620_v33 = vpack.c.bf16 %v2584_v31, %v2581_v24  ;;  %v2825_v24 = vunpack.i.h.bf16 %v2823_v40 }
 0x165   : > { %v3862_v49 = vpop.permute.xlu1 %2832 }
 0x166   : > { %2621 = vmatpush3.bf16.msra.mxu0 %v2620_v33 }
 0x169   : > { %2596 = vmatmul.mubr.msk.f32.vlgmr.msra.gmra.mrb[4].mxu0 %vm539_vm7, %v537_v35  ;;  %v3864_v50 = vpop.permute.xlu0 %2837  ;;  %v2848_v51 = vpop.permute.xlu1 %2847 }
 0x16a   : > { %v2850_v11 = vunpack.i.h.bf16 %v2848_v51  ;;  %v2849_v12 = vunpack.i.l.bf16 %v2848_v51 }
 0x16c   : > { %v780_v33 = vsel %vm777_vm8, %v2820_v8, %v2849_v12  ;;  %v781_v36 = vsel %vm777_vm8, %v2849_v12, %v2850_v11  ;;  %v615_v8 = vld [vmem:[%s4343_s4 + $0x8] sm:$0xff]  ;;  %v981_v12 = vsub.s32 4, %v3603_v2 }
 0x16d   : > { %v2843_v56 = vpop.permute.xlu0 %2842  ;;  %v2853_v58 = vpop.permute.xlu1 %2852 }
 0x16e   : > { %v2845_v13 = vunpack.i.h.bf16 %v2843_v56  ;;  %v2844_v14 = vunpack.i.l.bf16 %v2843_v56  ;;  %v2855_v17 = vunpack.i.h.bf16 %v2853_v58  ;;  %v2854_v18 = vunpack.i.l.bf16 %v2853_v58 }
 0x170   : > { %v779_v35 = vsel %vm777_vm8, %v2844_v14, %v2845_v13  ;;  %v778_v56 = vsel %vm777_vm8, %v2819_v16, %v2844_v14  ;;  %v840_v13 = vsel %vm539_vm7, %v2854_v18, %v2855_v17  ;;  %v1236_v14 = vld [vmem:[#allocation7 + $0x8] sm:$0xff]  ;;  %v839_v16 = vsel %vm539_vm7, %v2824_v28, %v2854_v18 }
 0x171   : > { %v2858_v61 = vpop.permute.xlu0 %2857  ;;  %v3866_v62 = vpop.permute.xlu1 %2867 }
 0x172   : > { %v2860_v21 = vunpack.i.h.bf16 %v2858_v61  ;;  %v2859_v22 = vunpack.i.l.bf16 %v2858_v61  ;;  %v2870_v37 = vunpack.i.h.bf16 %v3866_v62  ;;  %v2869_v51 = vunpack.i.l.bf16 %v3866_v62 }
 0x173   : > { %v2622_v62 = vpack.c.bf16 %v781_v36, %v779_v35 }
 0x174   : > { %v842_v11 = vsel %vm539_vm7, %v2859_v22, %v2860_v21  ;;  %v841_v35 = vsel %vm539_vm7, %v2825_v24, %v2859_v22  ;;  %v2834_v22 = vunpack.i.l.bf16 %v3862_v49 }
 0x175   : > { %v3868_v0 = vpop.permute.xlu0 %2862  ;;  %v3870_v3 = vpop.permute.xlu1 %2872  ;;  %v2626_v2 = vpack.c.bf16 %v842_v11, %v840_v13  ;;  %v2628_v24 = vpack.c.bf16 %v841_v35, %v839_v16  ;;  %v3921_v11 = vrot.slane %v3619_v6, %v981_v12 }
 0x176   : > { %v2865_v40 = vunpack.i.h.bf16 %v3868_v0  ;;  %v2875_v17 = vunpack.i.h.bf16 %v3870_v3  ;;  %v2874_v21 = vunpack.i.l.bf16 %v3870_v3  ;;  %v3912_v3 = vrot.slane %v3624_v7, %v981_v12 }
 0x178   : > { %v988_v7 = vmul.f32 %v3912_v3, %v3613_v5  ;;  %v987_v5 = vmul.f32 %v3921_v11, %v3654_v25 }
 0x179   : > { %v3872_v9 = vpop.permute.xlu0 %2882  ;;  %v3877_v20 = vpop.permute.xlu1 %2877 }
 0x17a   : > { %v2885_v18 = vunpack.i.h.bf16 %v3872_v9  ;;  %v2884_v28 = vunpack.i.l.bf16 %v3872_v9 }
 0x17c   : > { %v966_v13 = vsel %vm962_vm5, %v2884_v28, %v2885_v18 }
 0x17d   : > { %v3885_v58 = vpop.permute.xlu0 %2887 }
 0x181   : > { %v2893_v36 = vpop.permute.xlu0 %2892 }
 0x182   : > { %v2895_v6 = vunpack.i.h.bf16 %v2893_v36  ;;  %v2894_v12 = vunpack.i.l.bf16 %v2893_v36 }
 0x184   : > { %v1044_v36 = vsel %vm933_vm4, %v2894_v12, %v2895_v6 }
 0x23c   : > { %v609_v23 = vpop.f32.mrb[4].mxu0 }
 0x23d   : > { %v610_v30 = vadd.f32 %v609_v23, %v538_v15  ;;  %v2597_v31 = vpop.f32.mrb[5].mxu0  ;;  %v2864_v15 = vunpack.i.l.bf16 %v3868_v0  ;;  %v2830_v23 = vunpack.i.h.bf16 %v3860_v44  ;;  %v2829_v0 = vunpack.i.l.bf16 %v3860_v44 }
 0x23e   : > { %v3899_v31 = vpop.permute.xlu1 %2897 }
 0x23f   : > { %v613_v61 = vmax.f32 %v610_v30, 0.0  ;;  %v2624_v30 = vpack.c.bf16 %v780_v33, %v778_v56  ;;  %v902_v44 = vsel %vm900_vm6, %v2864_v15, %v2865_v40  ;;  %v904_v33 = vsel %vm900_vm6, %v2869_v51, %v2870_v37 }
 0x240   : > { %v2835_v56 = vunpack.i.h.bf16 %v3862_v49  ;;  %v901_v9 = vsel %vm900_vm6, %v2829_v0, %v2864_v15  ;;  %v964_v37 = vsel %vm962_vm5, %v2874_v21, %v2875_v17  ;;  %v990_v49 = vmul.f32 %v3912_v3, %v3657_v26 }
 0x241   : > { %2598 = vmatprep.subr.msk.mxu1 %vm625_vm10, %v613_v61  ;;  %v2634_v0 = vpack.c.bf16 %v966_v13, %v964_v37  ;;  %v989_v26 = vmul.f32 %v3921_v11, %v3666_v29  ;;  %v2840_v17 = vunpack.i.h.bf16 %v3864_v50  ;;  %v2880_v29 = vunpack.i.h.bf16 %v3877_v20 }
 0x242   : > { %2599 = vmatpush3.msk.msra.mxu1 %vm625_vm10, %v613_v61  ;;  %v903_v61 = vsel %vm900_vm6, %v2830_v23, %v2869_v51  ;;  %v2903_v40 = vpop.permute.xlu1 %2902  ;;  %v963_v51 = vsel %vm962_vm5, %v2834_v22, %v2874_v21  ;;  %v965_v16 = vsel %vm962_vm5, %v2835_v56, %v2884_v28  ;;  %v2908_v23 = vpop.permute.xlu0 %2907 }
 0x243   : > { %2623 = vmatprep.subr.bf16.mxu1 %v2622_v62  ;;  %2601 = vmatmul.mubr.msk.f32.vlgmr.msra.gmra.mrb[0].mxu1 %vm618_vm9, %v615_v8  ;;  %v2630_v8 = vpack.c.bf16 %v904_v33, %v902_v44  ;;  %v2632_v15 = vpack.c.bf16 %v903_v61, %v901_v9  ;;  %v2900_v62 = vunpack.i.h.bf16 %v3899_v31  ;;  %v2636_v21 = vpack.c.bf16 %v965_v16, %v963_v51 }
 0x244   : > { %2625 = vmatpush1.bf16.msra.mxu1 %v2624_v30  ;;  %2530 = vmatprep.mubr.msk.f32.mxu1 %vm539_vm7, %v1236_v14  ;;  %v2899_v14 = vunpack.i.l.bf16 %v3899_v31  ;;  %v2638_v30 = vpack.c.bf16 %v990_v49, %v988_v7  ;;  %v2839_v31 = vunpack.i.l.bf16 %v3864_v50  ;;  %v2904_v18 = vunpack.i.l.bf16 %v2903_v40 }
 0x245   : > { %2627 = vmatprep.subr.bf16.mxu1 %v2626_v2  ;;  %v2905_v2 = vunpack.i.h.bf16 %v2903_v40  ;;  %v2910_v28 = vunpack.i.h.bf16 %v2908_v23  ;;  %v2909_v44 = vunpack.i.l.bf16 %v2908_v23  ;;  %v2640_v33 = vpack.c.bf16 %v989_v26, %v987_v5 }
 0x246   : > { %v2918_v35 = vpop.permute.xlu1 %2917  ;;  %v1046_v25 = vsel %vm933_vm4, %v2899_v14, %v2900_v62  ;;  %v2913_v22 = vpop.permute.xlu0 %2912  ;;  %v1045_v56 = vsel %vm933_vm4, %v2840_v17, %v2899_v14  ;;  %v1043_v9 = vsel %vm933_vm4, %v2839_v31, %v2894_v12 }
 0x247   : > { %v2920_v61 = vunpack.i.h.bf16 %v2918_v35  ;;  %v2919_v50 = vunpack.i.l.bf16 %v2918_v35  ;;  %v2915_v37 = vunpack.i.h.bf16 %v2913_v22  ;;  %v2914_v13 = vunpack.i.l.bf16 %v2913_v22 }
 0x248   : > { %2629 = vmatpush1.bf16.msra.mxu1 %v2628_v24  ;;  %v2879_v24 = vunpack.i.l.bf16 %v3877_v20  ;;  %v1104_v7 = vsel %vm871_vm3, %v2904_v18, %v2905_v2  ;;  %v1106_v49 = vsel %vm871_vm3, %v2909_v44, %v2910_v28  ;;  %v2890_v20 = vunpack.i.h.bf16 %v3885_v58 }
 0x249   : > { %2631 = vmatprep.subr.bf16.mxu1 %v2630_v8  ;;  %v2642_v8 = vpack.c.bf16 %v1046_v25, %v1044_v36  ;;  %v2644_v62 = vpack.c.bf16 %v1045_v56, %v1043_v9  ;;  %v1105_v23 = vsel %vm871_vm3, %v2880_v29, %v2909_v44  ;;  %v2646_v6 = vpack.c.bf16 %v1106_v49, %v1104_v7  ;;  %v1238_v56 = vld [vmem:[#allocation7 + $0x18] sm:$0xff] }
 0x24a   : > { %v2923_v40 = vpop.permute.xlu1 %2922  ;;  %v1103_v51 = vsel %vm871_vm3, %v2879_v24, %v2904_v18  ;;  %v1164_v26 = vsel %vm810_vm2, %v2914_v13, %v2915_v37  ;;  %v1165_v17 = vsel %vm810_vm2, %v2890_v20, %v2919_v50  ;;  %v1235_v24 = vld [vmem:[#allocation7] sm:$0xff] }
 0x24b   : > { %v2925_v14 = vunpack.i.h.bf16 %v2923_v40  ;;  %v2924_v16 = vunpack.i.l.bf16 %v2923_v40  ;;  %v2648_v35 = vpack.c.bf16 %v1105_v23, %v1103_v51 }
 0x24c   : > { %2633 = vmatpush1.bf16.msra.mxu1 %v2632_v15  ;;  %v2889_v15 = vunpack.i.l.bf16 %v3885_v58 }
 0x24d   : > { %2635 = vmatprep.subr.bf16.mxu1 %v2634_v0  ;;  %v2928_v0 = vpop.permute.xlu0 %2927  ;;  %v1224_v28 = vsel %vm748_vm1, %v2924_v16, %v2925_v14 }
 0x24e   : > { %v2930_v12 = vunpack.i.h.bf16 %v2928_v0  ;;  %v2929_v5 = vunpack.i.l.bf16 %v2928_v0  ;;  %v1163_v2 = vsel %vm810_vm2, %v2889_v15, %v2914_v13 }
 0x250   : > { %2637 = vmatpush1.bf16.msra.mxu1 %v2636_v21  ;;  %v2933_v21 = vpop.permute.xlu1 %2932  ;;  %v1226_v44 = vsel %vm748_vm1, %v2929_v5, %v2930_v12 }
 0x251   : > { %2639 = vmatprep.subr.bf16.mxu1 %v2638_v30  ;;  %v1166_v30 = vsel %vm810_vm2, %v2919_v50, %v2920_v61  ;;  %v2935_v58 = vunpack.i.h.bf16 %v2933_v21  ;;  %v2934_v31 = vunpack.i.l.bf16 %v2933_v21  ;;  %v2654_v22 = vpack.c.bf16 %v1226_v44, %v1224_v28  ;;  %v1237_v61 = vld [vmem:[#allocation7 + $0x10] sm:$0xff] }
 0x252   : > { %v2650_v18 = vpack.c.bf16 %v1166_v30, %v1164_v26 }
 0x253   : > { %v1223_v36 = vsel %vm748_vm1, %v2934_v31, %v2924_v16  ;;  %v1225_v25 = vsel %vm748_vm1, %v2935_v58, %v2929_v5 }
 0x254   : > { %2641 = vmatpush1.bf16.msra.mxu1 %v2640_v33  ;;  %v2652_v33 = vpack.c.bf16 %v1165_v17, %v1163_v2  ;;  %v2656_v29 = vpack.c.bf16 %v1225_v25, %v1223_v36 }
 0x255   : > { %2643 = vmatprep.subr.bf16.mxu1 %v2642_v8  ;;  %v1280_v8 = vpop.permute.xlu0 %1279 }
 0x258   : > { %2645 = vmatpush1.bf16.msra.mxu1 %v2644_v62  ;;  %v1285_v62 = vpop.permute.xlu1 %1284 }
 0x259   : > { %2647 = vmatprep.subr.bf16.mxu1 %v2646_v6 }
 0x25c   : > { %2649 = vmatpush1.bf16.msra.mxu1 %v2648_v35 }
 0x25d   : > { %2651 = vmatprep.subr.bf16.mxu1 %v2650_v18 }
 0x260   : > { %2653 = vmatpush1.bf16.msra.mxu1 %v2652_v33 }
 0x261   : > { %2655 = vmatprep.subr.bf16.mxu1 %v2654_v22 }
 0x264   : > { %2657 = vmatpush1.bf16.msra.mxu1 %v2656_v29 }
 0x267   : > { %1358 = vmatmul.mubr.f32.vlgmr.msra.gmra.mrb[2].mxu1 %v1235_v24 }
 0x268   : > { %2531 = vmatprep.mubr.msk.f32.mxu1 %vm539_vm7, %v1238_v56 }
 0x26b   : > { %1364 = vmatmul.mubr.f32.gmra.mrb[4].mxu1 %v1237_v61 }
 0x316   : > { %v3958_v50 = vpop.f32.mrb[0].mxu1 }
 0x317   : > { %v3960_v9 = vpop.f32.mrb[1].mxu1 }
 0x33a   : > { %v1359_v40 = vpop.f32.mrb[2].mxu1 }
 0x33b   : > { %v1360_v37 = vadd.f32 %v1359_v40, %v1280_v8  ;;  %v1361_v13 = vpop.f32.mrb[3].mxu1 }
 0x33c   : > { %v3962_v7 = vadd.f32 %v1361_v13, %v1280_v8 }
 0x33d   : > { %v1423_v49 = vmul.f32 %v1360_v37, %v3705_v52  ;;  %v1381_v51 = vmul.f32 %v1360_v37, %v3693_v45  ;;  %v1465_v20 = vmul.f32 %v1360_v37, %v3731_v63  ;;  %v1507_v15 = vmul.f32 %v1360_v37, %v3745_v10 }
 0x33e   : > { %v1365_v14 = vpop.f32.mrb[4].mxu1  ;;  %v1424_v16 = vmul.f32 %v3962_v7, %v3687_v42  ;;  %v1382_v23 = vmul.f32 %v3962_v7, %v3683_v41  ;;  %v1466_v0 = vmul.f32 %v3962_v7, %v3695_v46  ;;  %v1508_v6 = vmul.f32 %v3962_v7, %v3721_v59 }
 0x33f   : > { %v1366_v12 = vadd.f32 %v1365_v14, %v1285_v62  ;;  %v1367_v5 = vpop.f32.mrb[5].mxu1  ;;  %v1560_v25 = vmul.f32 %v1360_v37, %v3711_v54  ;;  %v1602_v40 = vmul.f32 %v1360_v37, %v3757_v19 }
 0x340   : > { %v3976_v26 = vadd.f32 %v1367_v5, %v1285_v62  ;;  %v2958_v30 = vpack.i.bf16 %v1424_v16, %v1423_v49  ;;  %v2953_v17 = vpack.i.bf16 %v1382_v23, %v1381_v51  ;;  %v2963_v21 = vpack.i.bf16 %v1466_v0, %v1465_v20 }
 0x341   : > { %v1384_v35 = vmul.f32 %v1366_v12, %v3693_v45  ;;  %v2973_v58 = vpack.i.bf16 %v1508_v6, %v1507_v15  ;;  %v1426_v31 = vmul.f32 %v1366_v12, %v3705_v52  ;;  %v1468_v2 = vmul.f32 %v1366_v12, %v3731_v63 }
 0x342   : > { %2959 = vrot.lane.b32.xlu0 %v2958_v30, %s3374_s20  ;;  %2954 = vrot.lane.b32.xlu1 %v2953_v17, %s3375_s28  ;;  %v1385_v18 = vmul.f32 %v3976_v26, %v3683_v41  ;;  %v1427_v28 = vmul.f32 %v3976_v26, %v3687_v42  ;;  %v1469_v44 = vmul.f32 %v3976_v26, %v3695_v46 }
 0x343   : > { %v1510_v33 = vmul.f32 %v1366_v12, %v3745_v10  ;;  %v1511_v36 = vmul.f32 %v3976_v26, %v3721_v59  ;;  %v1563_v56 = vmul.f32 %v1366_v12, %v3711_v54  ;;  %v1605_v13 = vmul.f32 %v1366_v12, %v3757_v19 }
 0x344   : > { %v2968_v22 = vpack.i.bf16 %v1385_v18, %v1384_v35  ;;  %v2978_v29 = vpack.i.bf16 %v1427_v28, %v1426_v31  ;;  %v2983_v24 = vpack.i.bf16 %v1469_v44, %v1468_v2  ;;  %v1561_v49 = vmul.f32 %v3962_v7, %v3766_v27 }
 0x345   : > { %v2998_v61 = vpack.i.bf16 %v1511_v36, %v1510_v33  ;;  %v3003_v8 = vpack.i.bf16 %v1563_v56, %v1560_v25  ;;  %v3018_v51 = vpack.i.bf16 %v1605_v13, %v1602_v40  ;;  %v1644_v20 = vmul.f32 %v1360_v37, %v3775_v32  ;;  %v2945_v40 = vpop.permute.xlu0 %2944 }
 0x346   : > { %2969 = vrot.lane.b32.xlu0 %v2968_v22, %s3375_s28  ;;  %2964 = vrot.lane.b32.xlu1 %v2963_v21, %s3373_s17  ;;  %v1647_v15 = vmul.f32 %v1366_v12, %v3775_v32  ;;  %v1686_v62 = vmul.f32 %v1360_v37, %v3802_v57  ;;  %v1689_v14 = vmul.f32 %v1366_v12, %v3802_v57 }
 0x347   : > { %v4008_v0 = vmul.f32 %v3962_v7, %v3912_v3  ;;  %v4012_v6 = vmul.f32 %v3976_v26, %v3912_v3  ;;  %v2993_v5 = vpack.i.bf16 %v3778_v34, %v1561_v49  ;;  %v4016_v30 = vmul.f32 %v1360_v37, %v3921_v11 }
 0x348   : > { %v3033_v16 = vpack.i.bf16 %v1647_v15, %v1644_v20  ;;  %v3053_v23 = vpack.i.bf16 %v1689_v14, %v1686_v62  ;;  %v4019_v17 = vmul.f32 %v1366_v12, %v3921_v11  ;;  %v1564_v12 = vmul.f32 %v3976_v26, %v3766_v27 }
 0x349   : > { %v2674_v21 = vpack.c.bf16 %v4012_v6, %v4008_v0  ;;  %v1645_v31 = vmul.f32 %v3962_v7, %v3800_v55  ;;  %v1606_v28 = vmul.f32 %v3976_v26, %v3787_v43  ;;  %v1648_v33 = vmul.f32 %v3976_v26, %v3800_v55 }
 0x34a   : > { %2974 = vrot.lane.b32.xlu0 %v2973_v58, %s3372_s23  ;;  %2979 = vrot.lane.b32.xlu1 %v2978_v29, %s3374_s20  ;;  %v2676_v35 = vpack.c.bf16 %v4019_v17, %v4016_v30  ;;  %v1603_v58 = vmul.f32 %v3962_v7, %v3787_v43  ;;  %v3013_v2 = vpack.i.bf16 %v3778_v34, %v1564_v12  ;;  %v1723_v29 = vld [vmem:[#allocation9 + $0x8] sm:$0xff] }
 0x34b   : > { %v3023_v18 = vpack.i.bf16 %v3806_v60, %v1645_v31  ;;  %v3028_v44 = vpack.i.bf16 %v3792_v48, %v1606_v28  ;;  %v3038_v36 = vpack.i.bf16 %v3806_v60, %v1648_v33  ;;  %v1687_v25 = vmul.f32 %v3962_v7, %v3816_v1  ;;  %2532 = vmatprep.mubr.msk.f32.mxu0 %vm539_vm7, %v1723_v29  ;;  %v1762_v7 = vld [vmem:[%s4348_s9] sm:$0xff] }
 0x34c   : > { %v3008_v37 = vpack.i.bf16 %v3792_v48, %v1603_v58  ;;  %v1690_v22 = vmul.f32 %v3976_v26, %v3816_v1  ;;  %v1763_v26 = vld [vmem:[%s4348_s9 + $0x8] sm:$0xff]  ;;  %v2946_v33 = vunpack.i.l.bf16 %v2945_v40 }
 0x34e   : > { %2984 = vrot.lane.b32.xlu0 %v2983_v24, %s3373_s17  ;;  %2994 = vrot.lane.b32.xlu1 %v2993_v5, %s3371_s26  ;;  %v3043_v24 = vpack.i.bf16 %v3821_v4, %v1687_v25  ;;  %v3048_v56 = vpack.i.bf16 %v3821_v4, %v1690_v22 }
 0x352   : > { %2989 = vrot.lane.b32.xlu0 %v3709_v53, %s3372_s23  ;;  %2999 = vrot.lane.b32.xlu1 %v2998_v61, %s3372_s23  ;;  %v2940_v61 = vpop.permute.xlu1 %2939 }
 0x353   : > { %v2942_v14 = vunpack.i.h.bf16 %v2940_v61 }
 0x356   : > { %3009 = vrot.lane.b32.xlu0 %v3008_v37, %s3370_s19  ;;  %3004 = vrot.lane.b32.xlu1 %v3003_v8, %s3371_s26  ;;  %v2950_v8 = vpop.permute.xlu1 %2949 }
 0x35a   : > { %3014 = vrot.lane.b32.xlu0 %v3013_v2, %s3371_s26  ;;  %3024 = vrot.lane.b32.xlu1 %v3023_v18, %s3369_s16 }
 0x35e   : > { %3019 = vrot.lane.b32.xlu0 %v3018_v51, %s3370_s19  ;;  %3029 = vrot.lane.b32.xlu1 %v3028_v44, %s3370_s19  ;;  %v2947_v44 = vunpack.i.h.bf16 %v2945_v40  ;;  %v2952_v40 = vunpack.i.h.bf16 %v2950_v8 }
 0x362   : > { %3039 = vrot.lane.b32.xlu0 %v3038_v36, %s3369_s16  ;;  %3034 = vrot.lane.b32.xlu1 %v3033_v16, %s3369_s16  ;;  %v2941_v16 = vunpack.i.l.bf16 %v2940_v61  ;;  %v2951_v61 = vunpack.i.l.bf16 %v2950_v8 }
 0x366   : > { %3044 = vrot.lane.b32.xlu0 %v3043_v24, %s3368_s29  ;;  %3049 = vrot.lane.b32.xlu1 %v3048_v56, %s3368_s29 }
 0x36a   : > { %3054 = vrot.lane.b32.xlu0 %v3053_v23, %s3368_s29  ;;  %1766 = vperm.xlu1 %2937, %v1762_v7  }
 0x36e   : > { %1771 = vperm.xlu0 %2936, %v1763_v26   ;;  %3059 = vrot.lane.b32.xlu1 %v3681_v39, %s3375_s28 }
 0x372   : > { %3064 = vrot.lane.b32.xlu0 %v3679_v38, %s3374_s20  ;;  %3069 = vrot.lane.b32.xlu1 %v3697_v47, %s3373_s17 }
 0x3b4   : > { %v2960_v13 = vpop.permute.xlu0 %2959  ;;  %v2955_v49 = vpop.permute.xlu1 %2954 }
 0x3b5   : > { %v2957_v51 = vunpack.i.h.bf16 %v2955_v49  ;;  %v2956_v20 = vunpack.i.l.bf16 %v2955_v49  ;;  %v2962_v39 = vunpack.i.h.bf16 %v2960_v13  ;;  %v2961_v58 = vunpack.i.l.bf16 %v2960_v13 }
 0x3b7   : > { %v1404_v38 = vsel %vm777_vm8, %v2941_v16, %v2956_v20  ;;  %v1405_v47 = vsel %vm777_vm8, %v2956_v20, %v2957_v51  ;;  %v1446_v24 = vsel %vm539_vm7, %v2946_v33, %v2961_v58  ;;  %v1447_v7 = vsel %vm539_vm7, %v2961_v58, %v2962_v39 }
 0x3b8   : > { %v2970_v15 = vpop.permute.xlu0 %2969  ;;  %v2965_v62 = vpop.permute.xlu1 %2964 }
 0x3b9   : > { %v2972_v23 = vunpack.i.h.bf16 %v2970_v15  ;;  %v2971_v5 = vunpack.i.l.bf16 %v2970_v15  ;;  %v2967_v22 = vunpack.i.h.bf16 %v2965_v62  ;;  %v2966_v29 = vunpack.i.l.bf16 %v2965_v62 }
 0x3bb   : > { %v1406_v37 = vsel %vm777_vm8, %v2942_v14, %v2971_v5  ;;  %v1407_v12 = vsel %vm777_vm8, %v2971_v5, %v2972_v23  ;;  %v1488_v62 = vsel %vm900_vm6, %v2951_v61, %v2966_v29  ;;  %v1489_v16 = vsel %vm900_vm6, %v2966_v29, %v2967_v22 }
 0x3bc   : > { %v2660_v31 = vpack.c.bf16 %v1406_v37, %v1404_v38  ;;  %v2975_v2 = vpop.permute.xlu0 %2974  ;;  %v2980_v18 = vpop.permute.xlu1 %2979  ;;  %v2658_v28 = vpack.c.bf16 %v1407_v12, %v1405_v47 }
 0x3bd   : > { %v2982_v36 = vunpack.i.h.bf16 %v2980_v18  ;;  %v2981_v25 = vunpack.i.l.bf16 %v2980_v18  ;;  %v2977_v23 = vunpack.i.h.bf16 %v2975_v2  ;;  %v2976_v5 = vunpack.i.l.bf16 %v2975_v2 }
 0x3be   : > { %2659 = vmatprep.subr.bf16.mxu0 %v2658_v28 }
 0x3bf   : > { %v1448_v56 = vsel %vm539_vm7, %v2947_v44, %v2981_v25  ;;  %2661 = vmatpush1.bf16.msra.mxu0 %v2660_v31  ;;  %v1449_v26 = vsel %vm539_vm7, %v2981_v25, %v2982_v36  ;;  %v1531_v2 = vsel %vm962_vm5, %v2976_v5, %v2977_v23 }
 0x3c0   : > { %v2664_v13 = vpack.c.bf16 %v1448_v56, %v1446_v24  ;;  %v2985_v49 = vpop.permute.xlu0 %2984  ;;  %v2995_v51 = vpop.permute.xlu1 %2994  ;;  %v2662_v20 = vpack.c.bf16 %v1449_v26, %v1447_v7 }
 0x3c1   : > { %v2987_v15 = vunpack.i.h.bf16 %v2985_v49  ;;  %v2986_v14 = vunpack.i.l.bf16 %v2985_v49  ;;  %v2997_v56 = vunpack.i.h.bf16 %v2995_v51  ;;  %v2996_v7 = vunpack.i.l.bf16 %v2995_v51 }
 0x3c2   : > { %2663 = vmatprep.subr.bf16.mxu0 %v2662_v20 }
 0x3c3   : > { %v1490_v38 = vsel %vm900_vm6, %v2952_v40, %v2986_v14  ;;  %2665 = vmatpush1.bf16.msra.mxu0 %v2664_v13  ;;  %v1491_v39 = vsel %vm900_vm6, %v2986_v14, %v2987_v15  ;;  %v1585_v51 = vsel %vm933_vm4, %v2996_v7, %v2997_v56 }
 0x3c4   : > { %v2668_v58 = vpack.c.bf16 %v1490_v38, %v1488_v62  ;;  %v2990_v37 = vpop.permute.xlu0 %2989  ;;  %v3000_v47 = vpop.permute.xlu1 %2999  ;;  %v2666_v12 = vpack.c.bf16 %v1491_v39, %v1489_v16 }
 0x3c5   : > { %v2992_v31 = vunpack.i.h.bf16 %v2990_v37  ;;  %v2991_v8 = vunpack.i.l.bf16 %v2990_v37  ;;  %v3002_v18 = vunpack.i.h.bf16 %v3000_v47  ;;  %v3001_v28 = vunpack.i.l.bf16 %v3000_v47 }
 0x3c6   : > { %2667 = vmatprep.subr.bf16.mxu0 %v2666_v12 }
 0x3c7   : > { %v1530_v44 = vsel %vm962_vm5, %v2991_v8, %v2976_v5  ;;  %v1532_v33 = vsel %vm962_vm5, %v2992_v31, %v3001_v28  ;;  %2669 = vmatpush1.bf16.msra.mxu0 %v2668_v58  ;;  %v1533_v36 = vsel %vm962_vm5, %v3001_v28, %v3002_v18 }
 0x3c8   : > { %v2672_v25 = vpack.c.bf16 %v1532_v33, %v1530_v44  ;;  %v3010_v22 = vpop.permute.xlu0 %3009  ;;  %v3005_v29 = vpop.permute.xlu1 %3004  ;;  %v2670_v24 = vpack.c.bf16 %v1533_v36, %v1531_v2 }
 0x3c9   : > { %v3006_v26 = vunpack.i.l.bf16 %v3005_v29  ;;  %v3007_v49 = vunpack.i.h.bf16 %v3005_v29  ;;  %v3012_v15 = vunpack.i.h.bf16 %v3010_v22  ;;  %v3011_v14 = vunpack.i.l.bf16 %v3010_v22 }
 0x3ca   : > { %2671 = vmatprep.subr.bf16.mxu0 %v2670_v24 }
 0x3cb   : > { %2673 = vmatpush1.bf16.msra.mxu0 %v2672_v25  ;;  %v1584_v62 = vsel %vm933_vm4, %v3006_v26, %v2996_v7  ;;  %v1627_v12 = vsel %vm871_vm3, %v3011_v14, %v3012_v15 }
 0x3cc   : > { %v3015_v61 = vpop.permute.xlu0 %3014  ;;  %v3025_v13 = vpop.permute.xlu1 %3024  ;;  %2675 = vmatprep.subr.bf16.mxu0 %v2674_v21 }
 0x3cd   : > { %v3017_v20 = vunpack.i.h.bf16 %v3015_v61  ;;  %v3016_v40 = vunpack.i.l.bf16 %v3015_v61  ;;  %v3027_v47 = vunpack.i.h.bf16 %v3025_v13  ;;  %v3026_v31 = vunpack.i.l.bf16 %v3025_v13 }
 0x3cf   : > { %v1586_v16 = vsel %vm933_vm4, %v3007_v49, %v3016_v40  ;;  %2677 = vmatpush1.bf16.msra.mxu0 %v2676_v35  ;;  %v1587_v23 = vsel %vm933_vm4, %v3016_v40, %v3017_v20  ;;  %v1669_v24 = vsel %vm810_vm2, %v3026_v31, %v3027_v47 }
 0x3d0   : > { %v2680_v5 = vpack.c.bf16 %v1586_v16, %v1584_v62  ;;  %v3020_v0 = vpop.permute.xlu0 %3019  ;;  %v3030_v6 = vpop.permute.xlu1 %3029  ;;  %v2678_v21 = vpack.c.bf16 %v1587_v23, %v1585_v51 }
 0x3d1   : > { %v3022_v38 = vunpack.i.h.bf16 %v3020_v0  ;;  %v3021_v39 = vunpack.i.l.bf16 %v3020_v0  ;;  %v3032_v58 = vunpack.i.h.bf16 %v3030_v6  ;;  %v3031_v37 = vunpack.i.l.bf16 %v3030_v6 }
 0x3d2   : > { %2679 = vmatprep.subr.bf16.mxu0 %v2678_v21 }
 0x3d3   : > { %v1626_v30 = vsel %vm871_vm3, %v3021_v39, %v3011_v14  ;;  %v1628_v17 = vsel %vm871_vm3, %v3022_v38, %v3031_v37  ;;  %2681 = vmatpush1.bf16.msra.mxu0 %v2680_v5  ;;  %v1629_v35 = vsel %vm871_vm3, %v3031_v37, %v3032_v58  ;;  %v1722_v38 = vld [vmem:[#allocation9] sm:$0xff]  ;;  %v1725_v39 = vld [vmem:[#allocation9 + $0x18] sm:$0xff]  ;;  %v1724_v58 = vld [vmem:[#allocation9 + $0x10] sm:$0xff] }
 0x3d4   : > { %v2684_v8 = vpack.c.bf16 %v1628_v17, %v1626_v30  ;;  %v3040_v18 = vpop.permute.xlu0 %3039  ;;  %v3035_v28 = vpop.permute.xlu1 %3034  ;;  %v2682_v44 = vpack.c.bf16 %v1629_v35, %v1627_v12 }
 0x3d5   : > { %v3042_v33 = vunpack.i.h.bf16 %v3040_v18  ;;  %v3041_v2 = vunpack.i.l.bf16 %v3040_v18  ;;  %v3037_v36 = vunpack.i.h.bf16 %v3035_v28  ;;  %v3036_v25 = vunpack.i.l.bf16 %v3035_v28 }
 0x3d6   : > { %2683 = vmatprep.subr.bf16.mxu0 %v2682_v44 }
 0x3d7   : > { %v1670_v22 = vsel %vm810_vm2, %v3037_v36, %v3041_v2  ;;  %v1668_v29 = vsel %vm810_vm2, %v3036_v25, %v3026_v31  ;;  %2685 = vmatpush1.bf16.msra.mxu0 %v2684_v8  ;;  %v1671_v56 = vsel %vm810_vm2, %v3041_v2, %v3042_v33 }
 0x3d8   : > { %v2688_v7 = vpack.c.bf16 %v1670_v22, %v1668_v29  ;;  %v3045_v26 = vpop.permute.xlu0 %3044  ;;  %v3050_v61 = vpop.permute.xlu1 %3049  ;;  %v2686_v13 = vpack.c.bf16 %v1671_v56, %v1669_v24 }
 0x3d9   : > { %v3047_v49 = vunpack.i.h.bf16 %v3045_v26  ;;  %v3046_v20 = vunpack.i.l.bf16 %v3045_v26  ;;  %v3052_v40 = vunpack.i.h.bf16 %v3050_v61  ;;  %v3051_v15 = vunpack.i.l.bf16 %v3050_v61 }
 0x3da   : > { %2687 = vmatprep.subr.bf16.mxu0 %v2686_v13 }
 0x3db   : > { %2689 = vmatpush1.bf16.msra.mxu0 %v2688_v7  ;;  %v1711_v14 = vsel %vm748_vm1, %v3046_v20, %v3047_v49  ;;  %v1713_v62 = vsel %vm748_vm1, %v3051_v15, %v3052_v40 }
 0x3dc   : > { %v3055_v16 = vpop.permute.xlu0 %3054  ;;  %v2690_v51 = vpack.c.bf16 %v1713_v62, %v1711_v14 }
 0x3dd   : > { %v3057_v23 = vunpack.i.h.bf16 %v3055_v16  ;;  %v3056_v5 = vunpack.i.l.bf16 %v3055_v16 }
 0x3de   : > { %2691 = vmatprep.subr.bf16.mxu0 %v2690_v51 }
 0x3df   : > { %v1710_v0 = vsel %vm748_vm1, %v3056_v5, %v3046_v20  ;;  %v1712_v6 = vsel %vm748_vm1, %v3057_v23, %v3051_v15 }
 0x3e0   : > { %v2692_v21 = vpack.c.bf16 %v1712_v6, %v1710_v0 }
 0x3e2   : > { %2693 = vmatpush1.bf16.msra.mxu0 %v2692_v21 }
 0x3e5   : > { %1845 = vmatmul.mubr.f32.vlgmr.msra.gmra.mrb[6].mxu0 %v1722_v38 }
 0x3e6   : > { %2533 = vmatprep.mubr.msk.f32.mxu0 %vm539_vm7, %v1725_v39 }
 0x3e9   : > { %1851 = vmatmul.mubr.f32.gmra.mrb[8].mxu0 %v1724_v58  ;;  %v1767_v37 = vpop.permute.xlu1 %1766 }
 0x3ed   : > { %v1772_v35 = vpop.permute.xlu0 %1771 }
 0x4b8   : > { %v1846_v47 = vpop.f32.mrb[6].mxu0 }
 0x4b9   : > { %v1847_v12 = vadd.f32 %v1846_v47, %v1767_v37  ;;  %v1848_v31 = vpop.f32.mrb[7].mxu0 }
 0x4ba   : > { %v1849_v30 = vadd.f32 %v1848_v31, %v1767_v37  ;;  %v617_v31 = vld [vmem:[%s4344_s5 + $0x8] sm:$0xff] }
 0x4bb   : > { %v1857_v17 = vmax.f32 %v1847_v12, 0.0 }
 0x4bc   : > { %v4114_v8 = vmax.f32 %v1849_v30, 0.0  ;;  %v1852_v18 = vpop.f32.mrb[8].mxu0 }
 0x4bd   : > { %v1853_v28 = vadd.f32 %v1852_v18, %v1772_v35  ;;  %v1854_v44 = vpop.f32.mrb[9].mxu0  ;;  %v1914_v33 = vmul.f32 %v1857_v17, %v3705_v52  ;;  %v1872_v2 = vmul.f32 %v1857_v17, %v3693_v45  ;;  %v1956_v36 = vmul.f32 %v1857_v17, %v3731_v63 }
 0x4be   : > { %v1855_v25 = vadd.f32 %v1854_v44, %v1772_v35  ;;  %v1915_v22 = vmul.f32 %v4114_v8, %v3687_v42  ;;  %v1873_v29 = vmul.f32 %v4114_v8, %v3683_v41  ;;  %v1957_v24 = vmul.f32 %v4114_v8, %v3695_v46 }
 0x4bf   : > { %v1859_v56 = vmax.f32 %v1853_v28, 0.0  ;;  %v1998_v7 = vmul.f32 %v1857_v17, %v3745_v10  ;;  %v1999_v26 = vmul.f32 %v4114_v8, %v3721_v59  ;;  %v2051_v21 = vmul.f32 %v1857_v17, %v3711_v54 }
 0x4c0   : > { %v4128_v61 = vmax.f32 %v1855_v25, 0.0  ;;  %v3078_v13 = vpack.i.bf16 %v1915_v22, %v1914_v33  ;;  %v3073_v49 = vpack.i.bf16 %v1873_v29, %v1872_v2  ;;  %v3083_v20 = vpack.i.bf16 %v1957_v24, %v1956_v36 }
 0x4c1   : > { %v1875_v40 = vmul.f32 %v1859_v56, %v3693_v45  ;;  %v3093_v15 = vpack.i.bf16 %v1999_v26, %v1998_v7  ;;  %v1917_v14 = vmul.f32 %v1859_v56, %v3705_v52  ;;  %v1959_v62 = vmul.f32 %v1859_v56, %v3731_v63 }
 0x4c2   : > { %3079 = vrot.lane.b32.xlu0 %v3078_v13, %s3374_s20  ;;  %3074 = vrot.lane.b32.xlu1 %v3073_v49, %s3375_s28  ;;  %v1876_v16 = vmul.f32 %v4128_v61, %v3683_v41  ;;  %v1918_v51 = vmul.f32 %v4128_v61, %v3687_v42  ;;  %v1960_v23 = vmul.f32 %v4128_v61, %v3695_v46  ;;  %v616_v41 = vld [vmem:[%s4344_s5] sm:$0xff]  ;;  %v3060_v49 = vpop.permute.xlu1 %3059 }
 0x4c3   : > { %v2001_v45 = vmul.f32 %v1859_v56, %v3745_v10  ;;  %v2002_v52 = vmul.f32 %v4128_v61, %v3721_v59  ;;  %v2054_v38 = vmul.f32 %v1859_v56, %v3711_v54  ;;  %v2093_v42 = vmul.f32 %v1857_v17, %v3757_v19 }
 0x4c4   : > { %v3088_v5 = vpack.i.bf16 %v1876_v16, %v1875_v40  ;;  %v3098_v63 = vpack.i.bf16 %v1918_v51, %v1917_v14  ;;  %v3103_v0 = vpack.i.bf16 %v1960_v23, %v1959_v62  ;;  %v2096_v46 = vmul.f32 %v1859_v56, %v3757_v19 }
 0x4c5   : > { %v3118_v6 = vpack.i.bf16 %v2002_v52, %v2001_v45  ;;  %v3123_v59 = vpack.i.bf16 %v2054_v38, %v2051_v21  ;;  %v2052_v10 = vmul.f32 %v4114_v8, %v3766_v27  ;;  %v2135_v58 = vmul.f32 %v1857_v17, %v3775_v32 }
 0x4c6   : > { %3089 = vrot.lane.b32.xlu0 %v3088_v5, %s3375_s28  ;;  %3084 = vrot.lane.b32.xlu1 %v3083_v20, %s3373_s17  ;;  %v3138_v39 = vpack.i.bf16 %v2096_v46, %v2093_v42  ;;  %v2138_v54 = vmul.f32 %v1859_v56, %v3775_v32  ;;  %v696_v37 = vadd.f32 %v3960_v9, %v616_v41  ;;  %v3065_v20 = vpop.permute.xlu0 %3064  ;;  %v3070_v40 = vpop.permute.xlu1 %3069  ;;  %v3062_v45 = vunpack.i.h.bf16 %v3060_v49  ;;  %s2519_s28 = sshll.u32 %s446_s18, 5 }
 0x4c7   : > { %v2177_v12 = vmul.f32 %v1857_v17, %v3802_v57  ;;  %v2180_v19 = vmul.f32 %v1859_v56, %v3802_v57  ;;  %v4167_v30 = vmul.f32 %v4114_v8, %v3912_v3  ;;  %v4171_v32 = vmul.f32 %v4128_v61, %v3912_v3 }
 0x4c8   : > { %v3153_v47 = vpack.i.bf16 %v2138_v54, %v2135_v58  ;;  %v3113_v9 = vpack.i.bf16 %v3778_v34, %v2052_v10  ;;  %v4175_v18 = vmul.f32 %v1857_v17, %v3921_v11  ;;  %v4178_v57 = vmul.f32 %v1859_v56, %v3921_v11 }
 0x4c9   : > { %v3173_v35 = vpack.i.bf16 %v2180_v19, %v2177_v12  ;;  %v2710_v28 = vpack.c.bf16 %v4171_v32, %v4167_v30  ;;  %v701_v44 = vadd.f32 %v3958_v50, %v617_v31  ;;  %v2526_v33 = vmul.f32 -1.442695, %v696_v37 }
 0x4ca   : > { %3094 = vrot.lane.b32.xlu0 %v3093_v15, %s3372_s23  ;;  %3099 = vrot.lane.b32.xlu1 %v3098_v63, %s3374_s20  ;;  %v2712_v3 = vpack.c.bf16 %v4178_v57, %v4175_v18  ;;  %v2094_v17 = vmul.f32 %v4114_v8, %v3787_v43  ;;  %v2055_v50 = vmul.f32 %v4128_v61, %v3766_v27  ;;  %v3061_v52 = vunpack.i.l.bf16 %v3060_v49 }
 0x4cb   : > { %v2527_v2 = vmul.f32 -1.442695, %v701_v44  ;;  %3178 = vpow2.f32 %v2526_v33  ;;  %v2136_v36 = vmul.f32 %v4114_v8, %v3800_v55  ;;  %v2139_v24 = vmul.f32 %v4128_v61, %v3800_v55 }
 0x4cc   : > { %v3128_v11 = vpack.i.bf16 %v3792_v48, %v2094_v17  ;;  %v3133_v25 = vpack.i.bf16 %v3778_v34, %v2055_v50  ;;  %v2181_v26 = vmul.f32 %v4128_v61, %v3816_v1  ;;  %v3067_v58 = vunpack.i.h.bf16 %v3065_v20 }
 0x4cd   : > { %3180 = vpow2.f32 %v2527_v2  ;;  %v3143_v22 = vpack.i.bf16 %v3806_v60, %v2136_v36  ;;  %v3158_v7 = vpack.i.bf16 %v3806_v60, %v2139_v24  ;;  %v3066_v54 = vunpack.i.l.bf16 %v3065_v20 }
 0x4ce   : > { %3104 = vrot.lane.b32.xlu0 %v3103_v0, %s3373_s17  ;;  %3114 = vrot.lane.b32.xlu1 %v3113_v9, %s3371_s26  ;;  %v3168_v13 = vpack.i.bf16 %v3821_v4, %v2181_v26  ;;  %v3071_v33 = vunpack.i.l.bf16 %v3070_v40  ;;  %v3072_v36 = vunpack.i.h.bf16 %v3070_v40 }
 0x4d2   : > { %3109 = vrot.lane.b32.xlu0 %v3709_v53, %s3372_s23  ;;  %3119 = vrot.lane.b32.xlu1 %v3118_v6, %s3372_s23  ;;  %v2097_v53 = vmul.f32 %v4128_v61, %v3787_v43  ;;  %v2178_v43 = vmul.f32 %v4114_v8, %v3816_v1  ;;  %v2253_v1 = vld [vmem:[%s4350_s11] sm:$0xff]  ;;  %v2254_v8 = vld [vmem:[%s4350_s11 + $0x8] sm:$0xff]  ;;  %s4382_s23 = sld [smem:[#allocation19_spill]] }
 0x4d4   : > { %v3148_v29 = vpack.i.bf16 %v3792_v48, %v2097_v53  ;;  %v2214_v48 = vld [vmem:[%s4349_s10 + $0x8] sm:$0xff]  ;;  %v3163_v60 = vpack.i.bf16 %v3821_v4, %v2178_v43 }
 0x4d5   : > { %v3179_v27 = vpop.eup %3178  ;;  %2534 = vmatprep.mubr.msk.f32.mxu1 %vm539_vm7, %v2214_v48 }
 0x4d6   : > { %3129 = vrot.lane.b32.xlu0 %v3128_v11, %s3370_s19  ;;  %3124 = vrot.lane.b32.xlu1 %v3123_v59, %s3371_s26  ;;  %v710_v34 = vadd.f32 1.0, %v3179_v27 }
 0x4d7   : > { %v3181_v56 = vpop.eup %3180 }
 0x4d8   : > { %v711_v55 = vadd.f32 1.0, %v3181_v56  ;;  %3182 = vrcp.f32 %v710_v34  ;;  %p4385_p7 = scmp.ne.s32.totalorder %s4382_s23, 0 }
 0x4da   : > { %3134 = vrot.lane.b32.xlu0 %v3133_v25, %s3371_s26  ;;  %3144 = vrot.lane.b32.xlu1 %v3143_v22, %s3369_s16  ;;  %3184 = vrcp.f32 %v711_v55  ;;  %s448_s26 = scalar_lea.vmem [#allocation10], %s2519_s28 }
 0x4de   : > { %3139 = vrot.lane.b32.xlu0 %v3138_v39, %s3370_s19  ;;  %3149 = vrot.lane.b32.xlu1 %v3148_v29, %s3370_s19  ;;  %s2416_s19 = sshll.u32 %s448_s26, 4  ;;  %s4293_s19 = int_to_ptr.vmem [resolvable:$true] %s2416_s19 }
 0x4df   : > { %s3290_s13 = scalar_lea.vmem %s4293_s19, 512 }
 0x4e0   : > { %p3291_p12 = scmp.ne.s32.totalorder %s4293_s19, %s3290_s13 }
 0x4e2   : > { %3159 = vrot.lane.b32.xlu0 %v3158_v7, %s3369_s16  ;;  %3154 = vrot.lane.b32.xlu1 %v3153_v47, %s3369_s16  ;;  %v3183_v61 = vpop.eup %3182  ;;  %p3292_p8 = pnand %p3291_p12, %p4385_p7 }
 0x4e4   : > { %v3185_v4 = vpop.eup %3184  ;;  %p3293_p11 = pneg %p3292_p8 }
 0x4e6   : > { %3164 = vrot.lane.b32.xlu0 %v3163_v60, %s3368_s29  ;;  %3169 = vrot.lane.b32.xlu1 %v3168_v13, %s3368_s29 }
 0x4ea   : > { %3174 = vrot.lane.b32.xlu0 %v3173_v35, %s3368_s29  ;;  %2257 = vperm.xlu1 %2937, %v2253_v1   ;;  %s4384_s29 = smov %s4383_s21 }
 0x4ee   : > { %2262 = vperm.xlu0 %2936, %v2254_v8   ;;  %2378 = vperm.xlu1 %2937, %v3183_v61  }
 0x4f2   : > { %2383 = vperm.xlu0 %2936, %v3185_v4  }
 0x534   : > { %v3080_v15 = vpop.permute.xlu0 %3079  ;;  %v3075_v14 = vpop.permute.xlu1 %3074 }
 0x535   : > { %v3077_v62 = vunpack.i.h.bf16 %v3075_v14  ;;  %v3076_v16 = vunpack.i.l.bf16 %v3075_v14  ;;  %v3082_v0 = vunpack.i.h.bf16 %v3080_v15  ;;  %v3081_v6 = vunpack.i.l.bf16 %v3080_v15 }
 0x537   : > { %v1895_v21 = vsel %vm777_vm8, %v3061_v52, %v3076_v16  ;;  %v1896_v41 = vsel %vm777_vm8, %v3076_v16, %v3077_v62  ;;  %v1937_v31 = vsel %vm539_vm7, %v3066_v54, %v3081_v6  ;;  %v1938_v35 = vsel %vm539_vm7, %v3081_v6, %v3082_v0 }
 0x538   : > { %v3090_v51 = vpop.permute.xlu0 %3089  ;;  %v3085_v23 = vpop.permute.xlu1 %3084 }
 0x539   : > { %v3092_v5 = vunpack.i.h.bf16 %v3090_v51  ;;  %v3091_v63 = vunpack.i.l.bf16 %v3090_v51  ;;  %v3087_v12 = vunpack.i.h.bf16 %v3085_v23  ;;  %v3086_v19 = vunpack.i.l.bf16 %v3085_v23 }
 0x53b   : > { %v1897_v38 = vsel %vm777_vm8, %v3062_v45, %v3091_v63  ;;  %v1898_v42 = vsel %vm777_vm8, %v3091_v63, %v3092_v5  ;;  %v1979_v53 = vsel %vm900_vm6, %v3071_v33, %v3086_v19  ;;  %v1980_v27 = vsel %vm900_vm6, %v3086_v19, %v3087_v12 }
 0x53c   : > { %v2696_v46 = vpack.c.bf16 %v1897_v38, %v1895_v21  ;;  %v3095_v59 = vpop.permute.xlu0 %3094  ;;  %v3100_v10 = vpop.permute.xlu1 %3099  ;;  %v2694_v39 = vpack.c.bf16 %v1898_v42, %v1896_v41 }
 0x53d   : > { %v3102_v37 = vunpack.i.h.bf16 %v3100_v10  ;;  %v3101_v47 = vunpack.i.l.bf16 %v3100_v10  ;;  %v3097_v29 = vunpack.i.h.bf16 %v3095_v59  ;;  %v3096_v24 = vunpack.i.l.bf16 %v3095_v59 }
 0x53e   : > { %2695 = vmatprep.subr.bf16.mxu1 %v2694_v39 }
 0x53f   : > { %v1939_v9 = vsel %vm539_vm7, %v3067_v58, %v3101_v47  ;;  %2697 = vmatpush1.bf16.msra.mxu1 %v2696_v46  ;;  %v1940_v44 = vsel %vm539_vm7, %v3101_v47, %v3102_v37  ;;  %v2022_v4 = vsel %vm962_vm5, %v3096_v24, %v3097_v29 }
 0x540   : > { %v2700_v17 = vpack.c.bf16 %v1939_v9, %v1937_v31  ;;  %v3105_v2 = vpop.permute.xlu0 %3104  ;;  %v3115_v11 = vpop.permute.xlu1 %3114  ;;  %v2698_v50 = vpack.c.bf16 %v1940_v44, %v1938_v35 }
 0x541   : > { %v3107_v25 = vunpack.i.h.bf16 %v3105_v2  ;;  %v3106_v22 = vunpack.i.l.bf16 %v3105_v2  ;;  %v3117_v62 = vunpack.i.h.bf16 %v3115_v11  ;;  %v3116_v16 = vunpack.i.l.bf16 %v3115_v11 }
 0x542   : > { %2699 = vmatprep.subr.bf16.mxu1 %v2698_v50 }
 0x543   : > { %v1981_v34 = vsel %vm900_vm6, %v3072_v36, %v3106_v22  ;;  %2701 = vmatpush1.bf16.msra.mxu1 %v2700_v17  ;;  %v1982_v56 = vsel %vm900_vm6, %v3106_v22, %v3107_v25  ;;  %v2076_v41 = vsel %vm933_vm4, %v3116_v16, %v3117_v62 }
 0x544   : > { %v2704_v7 = vpack.c.bf16 %v1981_v34, %v1979_v53  ;;  %v3110_v43 = vpop.permute.xlu0 %3109  ;;  %v3120_v26 = vpop.permute.xlu1 %3119  ;;  %v2702_v48 = vpack.c.bf16 %v1982_v56, %v1980_v27 }
 0x545   : > { %v3112_v55 = vunpack.i.h.bf16 %v3110_v43  ;;  %v3111_v60 = vunpack.i.l.bf16 %v3110_v43  ;;  %v3122_v13 = vunpack.i.h.bf16 %v3120_v26  ;;  %v3121_v1 = vunpack.i.l.bf16 %v3120_v26 }
 0x546   : > { %2703 = vmatprep.subr.bf16.mxu1 %v2702_v48 }
 0x547   : > { %v2021_v8 = vsel %vm962_vm5, %v3111_v60, %v3096_v24  ;;  %v2023_v61 = vsel %vm962_vm5, %v3112_v55, %v3121_v1  ;;  %2705 = vmatpush1.bf16.msra.mxu1 %v2704_v7  ;;  %v2024_v49 = vsel %vm962_vm5, %v3121_v1, %v3122_v13 }
 0x548   : > { %v2708_v20 = vpack.c.bf16 %v2023_v61, %v2021_v8  ;;  %v3130_v40 = vpop.permute.xlu0 %3129  ;;  %v3125_v15 = vpop.permute.xlu1 %3124  ;;  %v2706_v14 = vpack.c.bf16 %v2024_v49, %v2022_v4  ;;  %v2213_v61 = vld [vmem:[%s4349_s10] sm:$0xff]  ;;  %v2216_v4 = vld [vmem:[%s4349_s10 + $0x18] sm:$0xff]  ;;  %v2215_v49 = vld [vmem:[%s4349_s10 + $0x10] sm:$0xff] }
 0x549   : > { %v3126_v51 = vunpack.i.l.bf16 %v3125_v15  ;;  %v3127_v52 = vunpack.i.h.bf16 %v3125_v15  ;;  %v3132_v0 = vunpack.i.h.bf16 %v3130_v40  ;;  %v3131_v6 = vunpack.i.l.bf16 %v3130_v40 }
 0x54a   : > { %2707 = vmatprep.subr.bf16.mxu1 %v2706_v14 }
 0x54b   : > { %2709 = vmatpush1.bf16.msra.mxu1 %v2708_v20  ;;  %v2075_v21 = vsel %vm933_vm4, %v3126_v51, %v3116_v16  ;;  %v2118_v37 = vsel %vm871_vm3, %v3131_v6, %v3132_v0 }
 0x54c   : > { %v3135_v23 = vpop.permute.xlu0 %3134  ;;  %v3145_v45 = vpop.permute.xlu1 %3144  ;;  %2711 = vmatprep.subr.bf16.mxu1 %v2710_v28 }
 0x54d   : > { %v3137_v5 = vunpack.i.h.bf16 %v3135_v23  ;;  %v3136_v63 = vunpack.i.l.bf16 %v3135_v23  ;;  %v3147_v54 = vunpack.i.h.bf16 %v3145_v45  ;;  %v3146_v47 = vunpack.i.l.bf16 %v3145_v45 }
 0x54f   : > { %v2077_v38 = vsel %vm933_vm4, %v3127_v52, %v3136_v63  ;;  %2713 = vmatpush1.bf16.msra.mxu1 %v2712_v3  ;;  %v2078_v42 = vsel %vm933_vm4, %v3136_v63, %v3137_v5  ;;  %v2160_v50 = vsel %vm810_vm2, %v3146_v47, %v3147_v54 }
 0x550   : > { %v2716_v46 = vpack.c.bf16 %v2077_v38, %v2075_v21  ;;  %v3140_v30 = vpop.permute.xlu0 %3139  ;;  %v3150_v32 = vpop.permute.xlu1 %3149  ;;  %v2714_v28 = vpack.c.bf16 %v2078_v42, %v2076_v41 }
 0x551   : > { %v3142_v59 = vunpack.i.h.bf16 %v3140_v30  ;;  %v3141_v10 = vunpack.i.l.bf16 %v3140_v30  ;;  %v3152_v39 = vunpack.i.h.bf16 %v3150_v32  ;;  %v3151_v58 = vunpack.i.l.bf16 %v3150_v32 }
 0x552   : > { %2715 = vmatprep.subr.bf16.mxu1 %v2714_v28 }
 0x553   : > { %v2117_v18 = vsel %vm871_vm3, %v3141_v10, %v3131_v6  ;;  %v2119_v57 = vsel %vm871_vm3, %v3142_v59, %v3151_v58  ;;  %2717 = vmatpush1.bf16.msra.mxu1 %v2716_v46  ;;  %v2120_v3 = vsel %vm871_vm3, %v3151_v58, %v3152_v39 }
 0x554   : > { %v2720_v12 = vpack.c.bf16 %v2119_v57, %v2117_v18  ;;  %v3160_v19 = vpop.permute.xlu0 %3159  ;;  %v3155_v31 = vpop.permute.xlu1 %3154  ;;  %v2718_v9 = vpack.c.bf16 %v2120_v3, %v2118_v37 }
 0x555   : > { %v3162_v35 = vunpack.i.h.bf16 %v3160_v19  ;;  %v3161_v44 = vunpack.i.l.bf16 %v3160_v19  ;;  %v3157_v33 = vunpack.i.h.bf16 %v3155_v31  ;;  %v3156_v17 = vunpack.i.l.bf16 %v3155_v31 }
 0x556   : > { %2719 = vmatprep.subr.bf16.mxu1 %v2718_v9 }
 0x557   : > { %v2161_v2 = vsel %vm810_vm2, %v3157_v33, %v3161_v44  ;;  %v2159_v11 = vsel %vm810_vm2, %v3156_v17, %v3146_v47  ;;  %2721 = vmatpush1.bf16.msra.mxu1 %v2720_v12  ;;  %v2162_v36 = vsel %vm810_vm2, %v3161_v44, %v3162_v35  ;;  %v3202_v47 = vld [vmem:[%s3608_s27] sm:$0xff]  ;;  %v3203_v12 = vld [vmem:[%s3608_s27 + $0x8] sm:$0xff] }
 0x558   : > { %v2724_v25 = vpack.c.bf16 %v2161_v2, %v2159_v11  ;;  %v3165_v22 = vpop.permute.xlu0 %3164  ;;  %v3170_v53 = vpop.permute.xlu1 %3169  ;;  %v2722_v27 = vpack.c.bf16 %v2162_v36, %v2160_v50  ;;  %v3204_v11 = vld [vmem:[%s3608_s27 + $0x10] sm:$0xff] }
 0x559   : > { %v3167_v29 = vunpack.i.h.bf16 %v3165_v22  ;;  %v3166_v24 = vunpack.i.l.bf16 %v3165_v22  ;;  %v3172_v34 = vunpack.i.h.bf16 %v3170_v53  ;;  %v3171_v56 = vunpack.i.l.bf16 %v3170_v53 }
 0x55a   : > { %2723 = vmatprep.subr.bf16.mxu1 %v2722_v27 }
 0x55b   : > { %2725 = vmatpush1.bf16.msra.mxu1 %v2724_v25  ;;  %v2202_v7 = vsel %vm748_vm1, %v3166_v24, %v3167_v29  ;;  %v2204_v43 = vsel %vm748_vm1, %v3171_v56, %v3172_v34  ;;  %v3205_v25 = vld [vmem:[%s3608_s27 + $0x18] sm:$0xff]  ;;  %s3380_s27 = smov [#allocation10]  }
 0x55c   : > { %v3175_v26 = vpop.permute.xlu0 %3174  ;;  %v2726_v48 = vpack.c.bf16 %v2204_v43, %v2202_v7  ;;  %s3294_s12 = sshll.u32 %s3380_s27, 4  ;;  %s3295_s12 = int_to_ptr.vmem [resolvable:$false] %s3294_s12 }
 0x55d   : > { %v3177_v55 = vunpack.i.h.bf16 %v3175_v26  ;;  %v3176_v60 = vunpack.i.l.bf16 %v3175_v26  ;;  %s3296_s14 = scalar_lea.vmem %s3295_s12, 1024  ;;  %p3297_p13 = scmp.lt.s32.totalorder %s4293_s19, %s3295_s12 }
 0x55e   : > { %2727 = vmatprep.subr.bf16.mxu1 %v2726_v48  ;;  %p3298_p1 = scmp.lt.s32.totalorder %s3296_s14, %s3290_s13 }
 0x55f   : > { %v2201_v13 = vsel %vm748_vm1, %v3176_v60, %v3166_v24  ;;  %v2203_v1 = vsel %vm748_vm1, %v3177_v55, %v3171_v56 }
 0x560   : > { %v2728_v8 = vpack.c.bf16 %v2203_v1, %v2201_v13  ;;  %p3299_p6 = por %p3298_p1, %p3297_p13 }
 0x562   : > { %2729 = vmatpush1.bf16.msra.mxu1 %v2728_v8  ;;  %p3300_p9 = pnand %p3299_p6, %p3293_p11 }
 0x565   : > { %2336 = vmatmul.mubr.f32.vlgmr.msra.gmra.mrb[6].mxu1 %v2213_v61 }
 0x566   : > { %2535 = vmatprep.mubr.msk.f32.mxu1 %vm539_vm7, %v2216_v4 }
 0x569   : > { %2342 = vmatmul.mubr.f32.gmra.mrb[8].mxu1 %v2215_v49  ;;  %v2258_v20 = vpop.permute.xlu1 %2257 }
 0x56d   : > { %v2263_v51 = vpop.permute.xlu0 %2262  ;;  %v2379_v58 = vpop.permute.xlu1 %2378 }
 0x571   : > { %v2384_v44 = vpop.permute.xlu0 %2383 }
 0x638   : > { %v2337_v40 = vpop.f32.mrb[6].mxu1 }
 0x639   : > { %v2338_v15 = vadd.f32 %v2337_v40, %v2258_v20  ;;  %v2339_v14 = vpop.f32.mrb[7].mxu1 }
 0x63a   : > { %v2340_v62 = vadd.f32 %v2339_v14, %v2258_v20 }
 0x63b   : > { %v2536_v16 = vmul.f32 -1.442695, %v2338_v15 }
 0x63c   : > { %v2537_v23 = vmul.f32 -1.442695, %v2340_v62  ;;  %v2343_v45 = vpop.f32.mrb[8].mxu1 }
 0x63d   : > { %3186 = vpow2.f32 %v2536_v16  ;;  %v2344_v52 = vadd.f32 %v2343_v45, %v2263_v51  ;;  %v2345_v5 = vpop.f32.mrb[9].mxu1 }
 0x63e   : > { %3188 = vpow2.f32 %v2537_v23  ;;  %v2346_v63 = vadd.f32 %v2345_v5, %v2263_v51 }
 0x63f   : > { %v2538_v0 = vmul.f32 -1.442695, %v2344_v52 }
 0x640   : > { %v2539_v6 = vmul.f32 -1.442695, %v2346_v63 }
 0x641   : > { %3190 = vpow2.f32 %v2538_v0 }
 0x642   : > { %3192 = vpow2.f32 %v2539_v6 }
 0x647   : > { %v3187_v21 = vpop.eup %3186 }
 0x648   : > { %v3189_v38 = vpop.eup %3188  ;;  %v2360_v41 = vadd.f32 1.0, %v3187_v21 }
 0x649   : > { %v2361_v42 = vadd.f32 1.0, %v3189_v38 }
 0x64a   : > { %3194 = vrcp.f32 %v2360_v41 }
 0x64b   : > { %v3191_v46 = vpop.eup %3190  ;;  %3196 = vrcp.f32 %v2361_v42 }
 0x64c   : > { %v3193_v30 = vpop.eup %3192  ;;  %v2362_v32 = vadd.f32 1.0, %v3191_v46 }
 0x64d   : > { %v2363_v28 = vadd.f32 1.0, %v3193_v30 }
 0x64e   : > { %3198 = vrcp.f32 %v2362_v32 }
 0x64f   : > { %3200 = vrcp.f32 %v2363_v28 }
 0x654   : > { %v3195_v59 = vpop.eup %3194 }
 0x655   : > { %v3197_v10 = vpop.eup %3196  ;;  %v2372_v39 = vsub.f32 1.0, %v3195_v59  ;;  %v2390_v18 = vmul.f32 %v3202_v47, %v3195_v59 }
 0x656   : > { %v2373_v54 = vsub.f32 1.0, %v3197_v10  ;;  %v2391_v19 = vmul.f32 %v3203_v12, %v3197_v10 }
 0x657   : > { %v2386_v37 = vmul.f32 %v2379_v58, %v2372_v39 }
 0x658   : > { %v3199_v57 = vpop.eup %3198  ;;  %v2387_v3 = vmul.f32 %v2379_v58, %v2373_v54 }
 0x659   : > { %v3201_v31 = vpop.eup %3200  ;;  %v2394_v9 = vadd.f32 %v2390_v18, %v2386_v37  ;;  %v2374_v35 = vsub.f32 1.0, %v3199_v57  ;;  %v2392_v50 = vmul.f32 %v3204_v11, %v3199_v57 }
 0x65a   : > { %v2395_v33 = vadd.f32 %v2391_v19, %v2387_v3  ;;  %v2375_v17 = vsub.f32 1.0, %v3201_v31  ;;  %v2393_v22 = vmul.f32 %v3205_v25, %v3201_v31 }
 0x65b   : > { %2398 = vst [vmem:[%s448_s26] sm:$0xff] %v2394_v9  ;;  %v2388_v2 = vmul.f32 %v2384_v44, %v2374_v35 }
 0x65c   : > { %2399 = vst [vmem:[%s448_s26 + $0x8] sm:$0xff] %v2395_v33  ;;  %v2389_v36 = vmul.f32 %v2384_v44, %v2375_v17 }
 0x65d   : > { %v2396_v53 = vadd.f32 %v2392_v50, %v2388_v2 }
 0x65e   : > { %v2397_v27 = vadd.f32 %v2393_v22, %v2389_v36 }
 0x65f   : > { %2400 = vst [vmem:[%s448_s26 + $0x10] sm:$0xff] %v2396_v53 }
 0x660   : > { %2401 = vst [vmem:[%s448_s26 + $0x18] sm:$0xff] %v2397_v27 }
 0x661   : > { %3303 = shalt.err (!%p3300_p9)
}
 0x662   : > { %s3304_s15 = scalar_lea.hbm %s4291_s24, 512  ;;  %s3308_s30 = scalar_lea.hbm %s4384_s29, 1024 }
 0x663   : > { %p3305_p2 = scmp.ne.s32.totalorder %s4291_s24, %s3304_s15  ;;  %p3309_p5 = scmp.lt.u32.totalorder %s4291_s24, %s4384_s29 }
 0x664   : > { %p3310_p10 = scmp.lt.u32.totalorder %s3308_s30, %s3304_s15  ;;  %p3312_p12 = scmp.lt.u32.totalorder %s3304_s15, %s4291_s24 }
 0x665   : > { %p3306_p0 = pnand %p3305_p2, %p4385_p7 }
 0x666   : > { %p3311_p4 = por %p3310_p10, %p3309_p5 }
 0x667   : > { %p3307_p3 = pneg %p3306_p0 }
 0x668   : > { %p3313_p8 = por %p3312_p12, %p3311_p4 }
 0x66a   : > { %p3314_p11 = pnand %p3313_p8, %p3307_p3 }
 0x66c   : > { %3317 = shalt.err (!%p3314_p11)
}
 0x66d   : > { %s3381_s16 = smov 256  }
 0x66e   : > { %2742 = dma.vmem_to_hbm [thread:$0]  (%p4385_p7), %s4293_s19, 512, %s4291_s24, %s4297_s25, %s3381_s16, %s3381_s16, %s3374_s20  }
 0x66f PF: > { %s4386_s21 = sld [smem:[#allocation16_spill]]  ;;  %s4387_s13 = sld [smem:[#allocation14_spill]] }
 0x670   : > { %s4388_s27 = sld [smem:[#allocation20_spill]] }
 0x675   : > { %p2764_p13 = scmp.ge.s32.totalorder %s4386_s21, 2  ;;  %s2431_s12 = sand.u32 1, %s4387_s13  }
 0x676   : > { %p4389_p1 = scmp.ne.s32.totalorder %s4388_s27, 0  ;;  %s2432_s14 = scalar_lea.sflag [#allocation6], %s2431_s12 }
 0x678   : > { %p2755_p6 = pnand %p2764_p13, %p4389_p1 }
 0x67a   : > { %3343 = dma.done.wait (!%p2755_p6), %s2432_s14, 512  }
 0x67b   : > { %3345 = vsyncadd (!%p2755_p6), %s2432_s14, 4294966784  ;;  %s4390_s24 = sld [smem:[#allocation17_spill]]  ;;  %s4391_s15 = sld [smem:[#allocation15_spill]] }
 0x67c   : > { %s4392_s23 = sld [smem:[#allocation18_spill]]  ;;  %s4393_s21 = smov %s3352_s22 }
 0x681   : > { %p24_p9 = scmp.ge.s32.totalorder %s4390_s24, 4   ;;  %s4394_s22 = smov %s4391_s15 }
 0x683   :  { %26 = sbr.rel (!%p24_p9) target bundleno = 7 (0x7), region = 116 }
 0x68a   :  { %2437 = vsyncpa [#allocation5], 1 }
 0x68b   :  { %2439 = vsyncpa [#allocation5 + $0x1], 1 }
 0x68c   :  { %2440 = vsyncpa [#allocation8], 1 }
 0x68d   :  { %2441 = vsyncpa [#allocation6], 1 }
 0x68e   :  { %2443 = vsyncpa [#allocation6 + $0x1], 1 }

</bundles_post_ra>
